<compile_context>
chip_gen: v7x
topology: tpu7x:2x2x1
jax: 0.10.0
libtpu: 0.0.40
codegen_flags: <defaults>
</compile_context>

<pallas_src>
from functools import partial

import numpy as np
import jax
import jax.numpy as jnp
from jax import lax
from jax.experimental import pallas as pl
from jax.experimental.pallas import tpu as pltpu


# ----------------------------- fused Pallas kernel --------------------------
#
# Per-step layouts:
#   x_ref : (1, 8*nb, 16) f32   rows = m*nb + n  (m = padded_row//4, n = sample in block),
#                               lanes = s*4 + w  (s = padded_row%4,  w = column 0..3).
#   w_ref : (536, 128) bf16     rows   0..223 = w3 (mlp1, h*32+c row order, 128-padded cols)
#                               rows 224..351 = w4 (out head, 128-padded)
#                               rows 352..511 = m2 (conv2 im2col weights, cols 0..63)
#                               rows 512..531 = m1 (conv1 im2col weights, cols 0..63)
#   b_ref : (4, 128) f32        row 0 = b1 (perm., cols 0..63), row 1 = b2, row 2 = b3, row 3 = b4
#   o_ref : (nb, 128) f32       lane-dense; logits live in lanes 0..1.

def _cnn8_kernel(x_ref, w_ref, b_ref, o_ref):
    f32, bf16 = jnp.float32, jnp.bfloat16
    nb = o_ref.shape[0]
    R = 7 * nb

    xs = x_ref[0]                                   # (8*nb, 16) residue-split padded input

    b1 = b_ref[0:1, 0:64]
    b2 = b_ref[1:2, 0:64]
    b3 = b_ref[2:3, :]
    b4 = b_ref[3:4, :]

    # ---- conv1: 5x5, pad 2, 1 -> 16 channels, + ReLU : ONE merged matmul -----------
    # LHS rows ordered (residue r, output row j, sample n); lanes = (kh, w_in).
    def win(m0, lo, hi):                            # residue-map rows m0..m0+6, lane slice
        return xs[m0 * nb:m0 * nb + R, lo:hi]

    lhs1 = jnp.concatenate([
        jnp.concatenate([win(0, 0, 16),  win(1, 0, 4)],  axis=1),   # conv rows h = 4j+0
        jnp.concatenate([win(0, 4, 16),  win(1, 0, 8)],  axis=1),   # conv rows h = 4j+1
        jnp.concatenate([win(0, 8, 16),  win(1, 0, 12)], axis=1),   # conv rows h = 4j+2
        jnp.concatenate([win(0, 12, 16), win(1, 0, 16)], axis=1),   # conv rows h = 4j+3
    ], axis=0).astype(bf16)                                         # (28*nb, 20)

    y1 = jnp.maximum(
        jnp.dot(lhs1, w_ref[512:532, 0:64], preferred_element_type=f32) + b1, 0.0)

    # 2x2 max pool: h-pairs = residue blocks, w-pairs = lane halves (permuted conv1 cols).
    p1e = jnp.maximum(y1[0:R], y1[R:2 * R])           # pooled rows 0,2,...,12
    p1o = jnp.maximum(y1[2 * R:3 * R], y1[3 * R:4 * R])  # pooled rows 1,3,...,13
    p1e = jnp.maximum(p1e[:, 0:32], p1e[:, 32:64])    # (7*nb, 32)  lanes = (w, c_in)
    p1o = jnp.maximum(p1o[:, 0:32], p1o[:, 32:64])

    # ---- conv2: 5x5, pad 2, 16 -> 32 channels, + ReLU : ONE merged matmul ----------
    # h zero-padding built as a value concat (no scratch, no per-step re-zeroing).
    zp = jnp.zeros((nb, 32), f32)
    ae = jnp.concatenate([zp, p1e, zp], axis=0)       # padded even pooled rows (9*nb, 32)
    ao = jnp.concatenate([zp, p1o, zp], axis=0)       # padded odd  pooled rows

    def taps(p):                                      # conv2 output rows i = 2j+p
        pieces = []
        for kh in range(5):
            q = p + kh
            buf = ae if q % 2 == 0 else ao
            off = (q // 2) * nb
            pieces.append(buf[off:off + R, :])        # (7*nb, 32)
        return jnp.concatenate(pieces, axis=1)        # (7*nb, 160)

    lhs2 = jnp.concatenate([taps(0), taps(1)], axis=0).astype(bf16)   # (14*nb, 160)
    y2 = jnp.maximum(
        jnp.dot(lhs2, w_ref[352:512, 0:64], preferred_element_type=f32) + b2, 0.0)

    p2 = jnp.maximum(y2[0:R], y2[R:2 * R])            # pool over h  (7*nb, 64)
    feat = jnp.maximum(p2[:, 0:32], p2[:, 32:64])     # pool over w  (7*nb, 32) rows=(h,n)

    # ---- mlp1 + ReLU : accumulated per-h matmuls (no sublane->lane flatten) --------
    hidden = jnp.zeros((nb, 128), f32) + b3
    for h in range(7):
        hidden = hidden + jnp.dot(
            feat[h * nb:(h + 1) * nb, :].astype(bf16),
            w_ref[h * 32:(h + 1) * 32, :],
            preferred_element_type=f32)
    hidden = jnp.maximum(hidden, 0.0).astype(bf16)

    # ---- output head: lane-dense (nb, 128) store; logits in lanes 0..1 -------------
    o_ref[...] = jnp.dot(hidden, w_ref[224:352, :], preferred_element_type=f32) + b4


# ------------------------------- JAX wrapper --------------------------------

@partial(jax.jit, static_argnames=("nb",))
def cnn8_forward(x, packed, nb=8):
    """x: (B, 28, 4) float32 -> (B, 2) logits.  One fused, batched Pallas kernel."""
    B, H, W = x.shape
    assert (H, W) == (28, 4), (H, W)
    assert nb % 8 == 0, nb

    G = pl.cdiv(B, nb)
    B_pad = G * nb
    # Cheap one-time relayout of the raw 448 B/sample input: pad H 28->32, pad batch,
    # and arrange each grid block as a contiguous (8*nb, 16) slab with rows (m, n) and
    # lanes (s, w) so the kernel's im2col uses only static contiguous slices.
    xp = jnp.pad(x, ((0, B_pad - B), (2, 2), (0, 0)))                 # (B_pad, 32, 4)
    xr = (xp.reshape(G, nb, 8, 16)
            .transpose(0, 2, 1, 3)
            .reshape(G, 8 * nb, 16))

    out = pl.pallas_call(
        _cnn8_kernel,
        out_shape=jax.ShapeDtypeStruct((B_pad, 128), jnp.float32),
        grid=(G,),
        in_specs=[
            pl.BlockSpec((1, 8 * nb, 16), lambda g: (g, 0, 0)),       # input slab
            pl.BlockSpec((536, 128), lambda g: (0, 0)),               # packed bf16 weights
            pl.BlockSpec((4, 128), lambda g: (0, 0)),                 # packed f32 biases
        ],
        out_specs=pl.BlockSpec((nb, 128), lambda g: (g, 0)),
        compiler_params=pltpu.CompilerParams(
            dimension_semantics=("parallel",)),       # v7x: shard batch blocks over both TCs
    )(xr, packed["w"], packed["b"])
    return out[:B, :2]


# --------------------------- parameter handling ------------------------------

def init_params(key):
    """PyTorch-layout parameters."""
    ks = jax.random.split(key, 8)

    def nrm(k, shape, fan_in):
        return jax.random.normal(k, shape, dtype=jnp.float32) / np.sqrt(fan_in)

    return dict(
        w1=nrm(ks[0], (16, 1, 5, 5), 25.0),   b1=nrm(ks[1], (16,), 25.0),
        w2=nrm(ks[2], (32, 16, 5, 5), 400.0), b2=nrm(ks[3], (32,), 400.0),
        w3=nrm(ks[4], (100, 224), 224.0),     b3=nrm(ks[5], (100,), 224.0),
        w4=nrm(ks[6], (2, 100), 100.0),       b4=nrm(ks[7], (2,), 100.0),
    )


def pack_params(p):
    """One-time repack of PyTorch-layout weights into ONE bf16 slab + ONE f32 bias slab."""
    w1 = np.asarray(p["w1"], np.float32); b1 = np.asarray(p["b1"], np.float32)
    w2 = np.asarray(p["w2"], np.float32); b2 = np.asarray(p["b2"], np.float32)
    w3 = np.asarray(p["w3"], np.float32); b3 = np.asarray(p["b3"], np.float32)
    w4 = np.asarray(p["w4"], np.float32); b4 = np.asarray(p["b4"], np.float32)

    def col1(w_out):  # permuted conv1 output column base: pool-over-w = lane halves
        return (w_out % 2) * 32 + (w_out // 2) * 16

    m1 = np.zeros((20, 64), np.float32)
    b1v = np.zeros((64,), np.float32)
    for w_out in range(4):
        b1v[col1(w_out):col1(w_out) + 16] = b1
        for kh in range(5):
            for w_in in range(4):
                kw = w_in - w_out + 2                # W zero-padding folded in here
                if 0 <= kw <= 4:
                    m1[kh * 4 + w_in, col1(w_out):col1(w_out) + 16] = w1[:, 0, kh, kw]

    m2 = np.zeros((160, 64), np.float32)
    b2v = np.zeros((64,), np.float32)
    for w_out in range(2):
        b2v[w_out * 32:(w_out + 1) * 32] = b2
        for kh in range(5):
            for w in range(2):
                kw = w - w_out + 2                   # always in {1,2,3}
                m2[kh * 32 + w * 16: kh * 32 + (w + 1) * 16,
                   w_out * 32:(w_out + 1) * 32] = w2[:, :, kh, kw].T

    # PyTorch flattens (C=32, H=7, W=1) as c*7 + h; kernel uses rows h*32 + c.
    w3p = np.zeros((224, 128), np.float32)
    w3p[:, :100] = w3.reshape(100, 32, 7).transpose(2, 1, 0).reshape(224, 100)
    b3v = np.zeros((128,), np.float32); b3v[:100] = b3

    w4p = np.zeros((128, 128), np.float32)
    w4p[:100, :2] = w4.T
    b4v = np.zeros((128,), np.float32); b4v[:2] = b4

    W = np.zeros((536, 128), np.float32)
    W[0:224, :] = w3p
    W[224:352, :] = w4p
    W[352:512, :64] = m2
    W[512:532, :64] = m1

    Bv = np.zeros((4, 128), np.float32)
    Bv[0, :64] = b1v
    Bv[1, :64] = b2v
    Bv[2, :] = b3v
    Bv[3, :] = b4v

    return dict(w=jnp.asarray(W, dtype=jnp.bfloat16), b=jnp.asarray(Bv, dtype=jnp.float32))


# --------------------- pure-JAX reference (PyTorch semantics) ----------------

def cnn8_reference(x, params):
    B = x.shape[0]
    xi = x[:, None, :, :]
    dn = ("NCHW", "OIHW", "NCHW")

    def conv(inp, w, b):
        y = lax.conv_general_dilated(inp, w, (1, 1), [(2, 2), (2, 2)],
                                     dimension_numbers=dn)
        return jnp.maximum(y + b.reshape(1, -1, 1, 1), 0.0)

    def pool(inp):
        return lax.reduce_window(inp, -jnp.inf, lax.max,
                                 (1, 1, 2, 2), (1, 1, 2, 2), "VALID")

    y = pool(conv(xi, params["w1"], params["b1"]))
    z = pool(conv(y, params["w2"], params["b2"]))
    f = z.reshape(B, -1)
    h = jnp.maximum(f @ params["w3"].T + params["b3"], 0.0)
    return h @ params["w4"].T + params["b4"]


if __name__ == "__main__":
    key = jax.random.PRNGKey(0)
    # Input consistent with flatten size 32*7*1: (B, H=28, W=4); B=26 exercises the
    # batch-padding path (nb=8 -> grid of 4 steps, even >=2 steps for v7x megacore).
    B = 26
    x = jax.random.normal(key, (B, 28, 4), dtype=jnp.float32)
    params = init_params(jax.random.PRNGKey(42))
    packed = pack_params(params)

    out = jax.block_until_ready(cnn8_forward(x, packed, nb=8))
    assert out.shape == (B, 2), out.shape

    ref = cnn8_reference(x, params)
    # bf16 matmul operands (f32 accumulation / elementwise) -> loosened tolerance.
    assert jnp.allclose(out, ref, rtol=5e-2, atol=8e-2), (
        float(jnp.max(jnp.abs(out - ref))), out[:3], ref[:3])

    print("KERNEL_OK")
</pallas_src>

<mosaic_0001>
module attributes {stable_mosaic.version = 11 : i64} {
  func.func @_cnn8_kernel(%arg0: i32, %arg1: memref<1x64x16xf32, #tpu.memory_space<vmem>>, %arg2: memref<536x128xbf16, #tpu.memory_space<vmem>>, %arg3: memref<4x128xf32, #tpu.memory_space<vmem>>, %arg4: memref<8x128xf32, #tpu.memory_space<vmem>>) attributes {dimension_semantics = [#tpu.dimension_semantics<parallel>], iteration_bounds = array<i64: 4>, scalar_prefetch = 0 : i64, scratch_operands = 0 : i64, tpu.core_type = #tpu.core_type<tc>, window_params = [{transform_indices = @transform_0, window_bounds = array<i64: 1, 64, 16>}, {pipeline_mode = #tpu.pipeline_mode<synchronous>, transform_indices = @transform_1, window_bounds = array<i64: 536, 128>}, {pipeline_mode = #tpu.pipeline_mode<synchronous>, transform_indices = @transform_2, window_bounds = array<i64: 4, 128>}, {transform_indices = @transform_3, window_bounds = array<i64: 8, 128>}]} {
    %c0 = arith.constant 0 : index
    %c0_0 = arith.constant 0 : index
    %c0_1 = arith.constant 0 : index
    %0 = vector.load %arg1[%c0, %c0_0, %c0_1] : memref<1x64x16xf32, #tpu.memory_space<vmem>>, vector<1x64x16xf32>
    %1 = vector.shape_cast %0 : vector<1x64x16xf32> to vector<64x16xf32>
    %c0_2 = arith.constant 0 : index
    %c0_3 = arith.constant 0 : index
    %2 = vector.load %arg3[%c0_2, %c0_3] : memref<4x128xf32, #tpu.memory_space<vmem>>, vector<1x64xf32>
    %c1 = arith.constant 1 : index
    %c0_4 = arith.constant 0 : index
    %3 = vector.load %arg3[%c1, %c0_4] : memref<4x128xf32, #tpu.memory_space<vmem>>, vector<1x64xf32>
    %c2 = arith.constant 2 : index
    %c0_5 = arith.constant 0 : index
    %4 = vector.load %arg3[%c2, %c0_5] : memref<4x128xf32, #tpu.memory_space<vmem>>, vector<1x128xf32>
    %c3 = arith.constant 3 : index
    %c0_6 = arith.constant 0 : index
    %5 = vector.load %arg3[%c3, %c0_6] : memref<4x128xf32, #tpu.memory_space<vmem>>, vector<1x128xf32>
    %6 = vector.extract_strided_slice %1 {offsets = [0, 0], sizes = [56, 16], strides = [1, 1]} : vector<64x16xf32> to vector<56x16xf32>
    %7 = vector.extract_strided_slice %1 {offsets = [8, 0], sizes = [56, 4], strides = [1, 1]} : vector<64x16xf32> to vector<56x4xf32>
    %8 = tpu.concatenate %6, %7 in 1 : vector<56x16xf32>, vector<56x4xf32> -> vector<56x20xf32>
    %9 = vector.extract_strided_slice %1 {offsets = [0, 4], sizes = [56, 12], strides = [1, 1]} : vector<64x16xf32> to vector<56x12xf32>
    %10 = vector.extract_strided_slice %1 {offsets = [8, 0], sizes = [56, 8], strides = [1, 1]} : vector<64x16xf32> to vector<56x8xf32>
    %11 = tpu.concatenate %9, %10 in 1 : vector<56x12xf32>, vector<56x8xf32> -> vector<56x20xf32>
    %12 = vector.extract_strided_slice %1 {offsets = [0, 8], sizes = [56, 8], strides = [1, 1]} : vector<64x16xf32> to vector<56x8xf32>
    %13 = vector.extract_strided_slice %1 {offsets = [8, 0], sizes = [56, 12], strides = [1, 1]} : vector<64x16xf32> to vector<56x12xf32>
    %14 = tpu.concatenate %12, %13 in 1 : vector<56x8xf32>, vector<56x12xf32> -> vector<56x20xf32>
    %15 = vector.extract_strided_slice %1 {offsets = [0, 12], sizes = [56, 4], strides = [1, 1]} : vector<64x16xf32> to vector<56x4xf32>
    %16 = vector.extract_strided_slice %1 {offsets = [8, 0], sizes = [56, 16], strides = [1, 1]} : vector<64x16xf32> to vector<56x16xf32>
    %17 = tpu.concatenate %15, %16 in 1 : vector<56x4xf32>, vector<56x16xf32> -> vector<56x20xf32>
    %18 = tpu.concatenate %8, %11, %14, %17 in 0 : vector<56x20xf32>, vector<56x20xf32>, vector<56x20xf32>, vector<56x20xf32> -> vector<224x20xf32>
    %19 = arith.truncf %18 : vector<224x20xf32> to vector<224x20xbf16>
    %c512 = arith.constant 512 : index
    %c0_7 = arith.constant 0 : index
    %20 = vector.load %arg2[%c512, %c0_7] : memref<536x128xbf16, #tpu.memory_space<vmem>>, vector<20x64xbf16>
    %cst = arith.constant dense<0.000000e+00> : vector<224x64xf32>
    %21 = tpu.matmul %19, %20, %cst {dimension_numbers = #tpu.dot_dimension_numbers<[1], [0], [0], [1], [0, 0, 1, 1], [], []>} : vector<224x20xbf16>, vector<20x64xbf16>, vector<224x64xf32> -> vector<224x64xf32>
    %22 = vector.broadcast %2 : vector<1x64xf32> to vector<224x64xf32>
    %23 = arith.addf %21, %22 : vector<224x64xf32>
    %cst_8 = arith.constant 0.000000e+00 : f32
    %24 = vector.broadcast %cst_8 : f32 to vector<224x64xf32>
    %25 = arith.maximumf %23, %24 : vector<224x64xf32>
    %26 = vector.extract_strided_slice %25 {offsets = [0, 0], sizes = [56, 64], strides = [1, 1]} : vector<224x64xf32> to vector<56x64xf32>
    %27 = vector.extract_strided_slice %25 {offsets = [56, 0], sizes = [56, 64], strides = [1, 1]} : vector<224x64xf32> to vector<56x64xf32>
    %28 = arith.maximumf %26, %27 : vector<56x64xf32>
    %29 = vector.extract_strided_slice %25 {offsets = [112, 0], sizes = [56, 64], strides = [1, 1]} : vector<224x64xf32> to vector<56x64xf32>
    %30 = vector.extract_strided_slice %25 {offsets = [168, 0], sizes = [56, 64], strides = [1, 1]} : vector<224x64xf32> to vector<56x64xf32>
    %31 = arith.maximumf %29, %30 : vector<56x64xf32>
    %32 = vector.extract_strided_slice %28 {offsets = [0, 0], sizes = [56, 32], strides = [1, 1]} : vector<56x64xf32> to vector<56x32xf32>
    %33 = vector.extract_strided_slice %28 {offsets = [0, 32], sizes = [56, 32], strides = [1, 1]} : vector<56x64xf32> to vector<56x32xf32>
    %34 = arith.maximumf %32, %33 : vector<56x32xf32>
    %35 = vector.extract_strided_slice %31 {offsets = [0, 0], sizes = [56, 32], strides = [1, 1]} : vector<56x64xf32> to vector<56x32xf32>
    %36 = vector.extract_strided_slice %31 {offsets = [0, 32], sizes = [56, 32], strides = [1, 1]} : vector<56x64xf32> to vector<56x32xf32>
    %37 = arith.maximumf %35, %36 : vector<56x32xf32>
    %cst_9 = arith.constant 0.000000e+00 : f32
    %38 = vector.broadcast %cst_9 : f32 to vector<8x32xf32>
    %39 = tpu.concatenate %38, %34, %38 in 0 : vector<8x32xf32>, vector<56x32xf32>, vector<8x32xf32> -> vector<72x32xf32>
    %40 = tpu.concatenate %38, %37, %38 in 0 : vector<8x32xf32>, vector<56x32xf32>, vector<8x32xf32> -> vector<72x32xf32>
    %41 = vector.extract_strided_slice %39 {offsets = [0, 0], sizes = [56, 32], strides = [1, 1]} : vector<72x32xf32> to vector<56x32xf32>
    %42 = vector.extract_strided_slice %40 {offsets = [0, 0], sizes = [56, 32], strides = [1, 1]} : vector<72x32xf32> to vector<56x32xf32>
    %43 = vector.extract_strided_slice %39 {offsets = [8, 0], sizes = [56, 32], strides = [1, 1]} : vector<72x32xf32> to vector<56x32xf32>
    %44 = vector.extract_strided_slice %40 {offsets = [8, 0], sizes = [56, 32], strides = [1, 1]} : vector<72x32xf32> to vector<56x32xf32>
    %45 = vector.extract_strided_slice %39 {offsets = [16, 0], sizes = [56, 32], strides = [1, 1]} : vector<72x32xf32> to vector<56x32xf32>
    %46 = tpu.concatenate %41, %42, %43, %44, %45 in 1 : vector<56x32xf32>, vector<56x32xf32>, vector<56x32xf32>, vector<56x32xf32>, vector<56x32xf32> -> vector<56x160xf32>
    %47 = vector.extract_strided_slice %40 {offsets = [0, 0], sizes = [56, 32], strides = [1, 1]} : vector<72x32xf32> to vector<56x32xf32>
    %48 = vector.extract_strided_slice %39 {offsets = [8, 0], sizes = [56, 32], strides = [1, 1]} : vector<72x32xf32> to vector<56x32xf32>
    %49 = vector.extract_strided_slice %40 {offsets = [8, 0], sizes = [56, 32], strides = [1, 1]} : vector<72x32xf32> to vector<56x32xf32>
    %50 = vector.extract_strided_slice %39 {offsets = [16, 0], sizes = [56, 32], strides = [1, 1]} : vector<72x32xf32> to vector<56x32xf32>
    %51 = vector.extract_strided_slice %40 {offsets = [16, 0], sizes = [56, 32], strides = [1, 1]} : vector<72x32xf32> to vector<56x32xf32>
    %52 = tpu.concatenate %47, %48, %49, %50, %51 in 1 : vector<56x32xf32>, vector<56x32xf32>, vector<56x32xf32>, vector<56x32xf32>, vector<56x32xf32> -> vector<56x160xf32>
    %53 = tpu.concatenate %46, %52 in 0 : vector<56x160xf32>, vector<56x160xf32> -> vector<112x160xf32>
    %54 = arith.truncf %53 : vector<112x160xf32> to vector<112x160xbf16>
    %c352 = arith.constant 352 : index
    %c0_10 = arith.constant 0 : index
    %55 = vector.load %arg2[%c352, %c0_10] : memref<536x128xbf16, #tpu.memory_space<vmem>>, vector<160x64xbf16>
    %cst_11 = arith.constant dense<0.000000e+00> : vector<112x64xf32>
    %56 = tpu.matmul %54, %55, %cst_11 {dimension_numbers = #tpu.dot_dimension_numbers<[1], [0], [0], [1], [0, 0, 1, 1], [], []>} : vector<112x160xbf16>, vector<160x64xbf16>, vector<112x64xf32> -> vector<112x64xf32>
    %57 = vector.broadcast %3 : vector<1x64xf32> to vector<112x64xf32>
    %58 = arith.addf %56, %57 : vector<112x64xf32>
    %cst_12 = arith.constant 0.000000e+00 : f32
    %59 = vector.broadcast %cst_12 : f32 to vector<112x64xf32>
    %60 = arith.maximumf %58, %59 : vector<112x64xf32>
    %61 = vector.extract_strided_slice %60 {offsets = [0, 0], sizes = [56, 64], strides = [1, 1]} : vector<112x64xf32> to vector<56x64xf32>
    %62 = vector.extract_strided_slice %60 {offsets = [56, 0], sizes = [56, 64], strides = [1, 1]} : vector<112x64xf32> to vector<56x64xf32>
    %63 = arith.maximumf %61, %62 : vector<56x64xf32>
    %64 = vector.extract_strided_slice %63 {offsets = [0, 0], sizes = [56, 32], strides = [1, 1]} : vector<56x64xf32> to vector<56x32xf32>
    %65 = vector.extract_strided_slice %63 {offsets = [0, 32], sizes = [56, 32], strides = [1, 1]} : vector<56x64xf32> to vector<56x32xf32>
    %66 = arith.maximumf %64, %65 : vector<56x32xf32>
    %cst_13 = arith.constant 0.000000e+00 : f32
    %67 = vector.broadcast %cst_13 : f32 to vector<8x128xf32>
    %68 = vector.broadcast %4 : vector<1x128xf32> to vector<8x128xf32>
    %69 = arith.addf %67, %68 : vector<8x128xf32>
    %70 = vector.extract_strided_slice %66 {offsets = [0, 0], sizes = [8, 32], strides = [1, 1]} : vector<56x32xf32> to vector<8x32xf32>
    %71 = arith.truncf %70 : vector<8x32xf32> to vector<8x32xbf16>
    %c0_14 = arith.constant 0 : index
    %c0_15 = arith.constant 0 : index
    %72 = vector.load %arg2[%c0_14, %c0_15] : memref<536x128xbf16, #tpu.memory_space<vmem>>, vector<32x128xbf16>
    %cst_16 = arith.constant dense<0.000000e+00> : vector<8x128xf32>
    %73 = tpu.matmul %71, %72, %cst_16 {dimension_numbers = #tpu.dot_dimension_numbers<[1], [0], [0], [1], [0, 0, 1, 1], [], []>} : vector<8x32xbf16>, vector<32x128xbf16>, vector<8x128xf32> -> vector<8x128xf32>
    %74 = arith.addf %69, %73 : vector<8x128xf32>
    %75 = vector.extract_strided_slice %66 {offsets = [8, 0], sizes = [8, 32], strides = [1, 1]} : vector<56x32xf32> to vector<8x32xf32>
    %76 = arith.truncf %75 : vector<8x32xf32> to vector<8x32xbf16>
    %c32 = arith.constant 32 : index
    %c0_17 = arith.constant 0 : index
    %77 = vector.load %arg2[%c32, %c0_17] : memref<536x128xbf16, #tpu.memory_space<vmem>>, vector<32x128xbf16>
    %cst_18 = arith.constant dense<0.000000e+00> : vector<8x128xf32>
    %78 = tpu.matmul %76, %77, %cst_18 {dimension_numbers = #tpu.dot_dimension_numbers<[1], [0], [0], [1], [0, 0, 1, 1], [], []>} : vector<8x32xbf16>, vector<32x128xbf16>, vector<8x128xf32> -> vector<8x128xf32>
    %79 = arith.addf %74, %78 : vector<8x128xf32>
    %80 = vector.extract_strided_slice %66 {offsets = [16, 0], sizes = [8, 32], strides = [1, 1]} : vector<56x32xf32> to vector<8x32xf32>
    %81 = arith.truncf %80 : vector<8x32xf32> to vector<8x32xbf16>
    %c64 = arith.constant 64 : index
    %c0_19 = arith.constant 0 : index
    %82 = vector.load %arg2[%c64, %c0_19] : memref<536x128xbf16, #tpu.memory_space<vmem>>, vector<32x128xbf16>
    %cst_20 = arith.constant dense<0.000000e+00> : vector<8x128xf32>
    %83 = tpu.matmul %81, %82, %cst_20 {dimension_numbers = #tpu.dot_dimension_numbers<[1], [0], [0], [1], [0, 0, 1, 1], [], []>} : vector<8x32xbf16>, vector<32x128xbf16>, vector<8x128xf32> -> vector<8x128xf32>
    %84 = arith.addf %79, %83 : vector<8x128xf32>
    %85 = vector.extract_strided_slice %66 {offsets = [24, 0], sizes = [8, 32], strides = [1, 1]} : vector<56x32xf32> to vector<8x32xf32>
    %86 = arith.truncf %85 : vector<8x32xf32> to vector<8x32xbf16>
    %c96 = arith.constant 96 : index
    %c0_21 = arith.constant 0 : index
    %87 = vector.load %arg2[%c96, %c0_21] : memref<536x128xbf16, #tpu.memory_space<vmem>>, vector<32x128xbf16>
    %cst_22 = arith.constant dense<0.000000e+00> : vector<8x128xf32>
    %88 = tpu.matmul %86, %87, %cst_22 {dimension_numbers = #tpu.dot_dimension_numbers<[1], [0], [0], [1], [0, 0, 1, 1], [], []>} : vector<8x32xbf16>, vector<32x128xbf16>, vector<8x128xf32> -> vector<8x128xf32>
    %89 = arith.addf %84, %88 : vector<8x128xf32>
    %90 = vector.extract_strided_slice %66 {offsets = [32, 0], sizes = [8, 32], strides = [1, 1]} : vector<56x32xf32> to vector<8x32xf32>
    %91 = arith.truncf %90 : vector<8x32xf32> to vector<8x32xbf16>
    %c128 = arith.constant 128 : index
    %c0_23 = arith.constant 0 : index
    %92 = vector.load %arg2[%c128, %c0_23] : memref<536x128xbf16, #tpu.memory_space<vmem>>, vector<32x128xbf16>
    %cst_24 = arith.constant dense<0.000000e+00> : vector<8x128xf32>
    %93 = tpu.matmul %91, %92, %cst_24 {dimension_numbers = #tpu.dot_dimension_numbers<[1], [0], [0], [1], [0, 0, 1, 1], [], []>} : vector<8x32xbf16>, vector<32x128xbf16>, vector<8x128xf32> -> vector<8x128xf32>
    %94 = arith.addf %89, %93 : vector<8x128xf32>
    %95 = vector.extract_strided_slice %66 {offsets = [40, 0], sizes = [8, 32], strides = [1, 1]} : vector<56x32xf32> to vector<8x32xf32>
    %96 = arith.truncf %95 : vector<8x32xf32> to vector<8x32xbf16>
    %c160 = arith.constant 160 : index
    %c0_25 = arith.constant 0 : index
    %97 = vector.load %arg2[%c160, %c0_25] : memref<536x128xbf16, #tpu.memory_space<vmem>>, vector<32x128xbf16>
    %cst_26 = arith.constant dense<0.000000e+00> : vector<8x128xf32>
    %98 = tpu.matmul %96, %97, %cst_26 {dimension_numbers = #tpu.dot_dimension_numbers<[1], [0], [0], [1], [0, 0, 1, 1], [], []>} : vector<8x32xbf16>, vector<32x128xbf16>, vector<8x128xf32> -> vector<8x128xf32>
    %99 = arith.addf %94, %98 : vector<8x128xf32>
    %100 = vector.extract_strided_slice %66 {offsets = [48, 0], sizes = [8, 32], strides = [1, 1]} : vector<56x32xf32> to vector<8x32xf32>
    %101 = arith.truncf %100 : vector<8x32xf32> to vector<8x32xbf16>
    %c192 = arith.constant 192 : index
    %c0_27 = arith.constant 0 : index
    %102 = vector.load %arg2[%c192, %c0_27] : memref<536x128xbf16, #tpu.memory_space<vmem>>, vector<32x128xbf16>
    %cst_28 = arith.constant dense<0.000000e+00> : vector<8x128xf32>
    %103 = tpu.matmul %101, %102, %cst_28 {dimension_numbers = #tpu.dot_dimension_numbers<[1], [0], [0], [1], [0, 0, 1, 1], [], []>} : vector<8x32xbf16>, vector<32x128xbf16>, vector<8x128xf32> -> vector<8x128xf32>
    %104 = arith.addf %99, %103 : vector<8x128xf32>
    %cst_29 = arith.constant 0.000000e+00 : f32
    %105 = vector.broadcast %cst_29 : f32 to vector<8x128xf32>
    %106 = arith.maximumf %104, %105 : vector<8x128xf32>
    %107 = arith.truncf %106 : vector<8x128xf32> to vector<8x128xbf16>
    %c224 = arith.constant 224 : index
    %c0_30 = arith.constant 0 : index
    %108 = vector.load %arg2[%c224, %c0_30] : memref<536x128xbf16, #tpu.memory_space<vmem>>, vector<128x128xbf16>
    %cst_31 = arith.constant dense<0.000000e+00> : vector<8x128xf32>
    %109 = tpu.matmul %107, %108, %cst_31 {dimension_numbers = #tpu.dot_dimension_numbers<[1], [0], [0], [1], [0, 0, 1, 1], [], []>} : vector<8x128xbf16>, vector<128x128xbf16>, vector<8x128xf32> -> vector<8x128xf32>
    %110 = vector.broadcast %5 : vector<1x128xf32> to vector<8x128xf32>
    %111 = arith.addf %109, %110 : vector<8x128xf32>
    %c0_32 = arith.constant 0 : index
    %c0_33 = arith.constant 0 : index
    %112 = vector.load %arg4[%c0_32, %c0_33] : memref<8x128xf32, #tpu.memory_space<vmem>>, vector<8x128xf32>
    tpu.vector_store %arg4[%c0_32, %c0_33], %111 {strides = array<i32>} : memref<8x128xf32, #tpu.memory_space<vmem>>, vector<8x128xf32>,
    return
  }
  func.func @transform_0(%arg0: i32) -> (i32, i32, i32) {
    %c0_i32 = arith.constant 0 : i32
    %c0_i32_0 = arith.constant 0 : i32
    %c0_i32_1 = arith.constant 0 : i32
    return %arg0, %c0_i32, %c0_i32_0 : i32, i32, i32
  }
  func.func @transform_1(%arg0: i32) -> (i32, i32) {
    %c0_i32 = arith.constant 0 : i32
    %c0_i32_0 = arith.constant 0 : i32
    %c0_i32_1 = arith.constant 0 : i32
    return %c0_i32, %c0_i32_0 : i32, i32
  }
  func.func @transform_2(%arg0: i32) -> (i32, i32) {
    %c0_i32 = arith.constant 0 : i32
    %c0_i32_0 = arith.constant 0 : i32
    %c0_i32_1 = arith.constant 0 : i32
    return %c0_i32, %c0_i32_0 : i32, i32
  }
  func.func @transform_3(%arg0: i32) -> (i32, i32) {
    %c0_i32 = arith.constant 0 : i32
    %c0_i32_0 = arith.constant 0 : i32
    return %arg0, %c0_i32 : i32, i32
  }
}

</mosaic_0001>

<bundles_post_ra>
// kernel: cnn8_forward.1
= control target key start
LH: loop header
LB: loop body
LE: loop exit
PB: predicated region body
PF: predicated region fallthrough
CT: control target
= control target key end

     0   :  { %s2347_s12 = smov 0   ;;  %s2879_s0 = inlined_call_operand.vmem [shape: f32[4,64,16], index: 0, kind: input, shape index: {}]   ;;  %s2880_s1 = inlined_call_operand.vmem [shape: bf16[536,128], index: 1, kind: input, shape index: {}]   ;;  %s2881_s2 = inlined_call_operand.vmem [shape: f32[4,128], index: 2, kind: input, shape index: {}]   ;;  %s2882_s3 = inlined_call_operand.vmem [shape: f32[32,128], index: 3, kind: output, shape index: {}]  }
   0x1 LB: > { %s1749_s13 = sadd.s32 4294967295, %s2312_s12   ;;  %p1753_p0 = scmp.ge.s32.totalorder %s2312_s12, 1  ;;  %s2312_s12 = sphi %s2347_s12, %s13_s12  }
   0x2   : > { %p137_p1 = scmp.lt.s32.totalorder %s2312_s12, 5 }
   0x4   : > { %p138_p2 = pnand %p1753_p0, %p137_p1 }
   0x5   : > { %p160_p3 = scmp.lt.s32.totalorder (!%p138_p2), %s1749_s13, 3  ;;  %v2272_v0 = vld [vmem:[%s2880_s1 + $0x100] sm:$0xff] (!%p138_p2)   ;;  %v2273_v1 = vld [vmem:[%s2880_s1 + $0x108] ss:$0 sps:$4 sm:$0x33] (!%p138_p2)   ;;  %vm442_vm0 = vcmask (!%p138_p2), 1041408  }
   0x6   : > { %141 = sbr.rel (%p138_p2) target bundleno = 1520 (0x5f0), region = 32  ;;  %1872 = vmatprep.subr.bf16.mxu0 (!%p138_p2), %v2272_v0  ;;  %v444_v2 = vsel (!%p138_p2), %vm442_vm0, %v2273_v1, 0  ;;  %s2314_s22 = smov (!%p138_p2), 16   ;;  %vm210_vm1 = vcmask (!%p138_p2), 130048   ;;  %vm399_vm2 = vcmask (!%p138_p2), 162816   ;;  %vm261_vm3 = vcmask (!%p138_p2), 97280  }
   0x7   : > { %1873 = vmatpush3.bf16.msra.mxu0 (!%p138_p2), %v2272_v0  ;;  %s2315_s23 = smov (!%p138_p2), 12   ;;  %s2316_s24 = smov (!%p138_p2), 124   ;;  %vm311_vm4 = vcmask (!%p138_p2), 64512   ;;  %vm361_vm5 = vcmask (!%p138_p2), 31744   ;;  %vm781_vm6 = vcmask (!%p138_p2), 261120   ;;  %vm789_vm7 = vcmask (!%p138_p2), 523264  }
   0x8   : > { %2005 = vmatprep.subr.msk.bf16.mxu0 (!%p138_p2), %vm442_vm0, %v2273_v1  ;;  %s2317_s25 = smov (!%p138_p2), 8   ;;  %s2318_s26 = smov (!%p138_p2), 120   ;;  %vm797_vm8 = vcmask (!%p138_p2), 785408   ;;  %vm2326_vm9 = vmmov (!%p138_p2), 0  }
   0x9   : > { %s2319_s27 = smov (!%p138_p2), 4   ;;  %s2320_s28 = smov (!%p138_p2), 116  }
   0xa   : > { %s2322_s4 = smov (!%p138_p2), 96  }
   0xb   : > { %1875 = vmatpush3.bf16.msra.mxu0 (!%p138_p2), %v444_v2 }
   0xd   : > { %s2884_s13 = smov (!%p160_p3, %s1749_s13), 3 }
   0xe   : > { %s1825_s18 = sshll.u32 %s2884_s13, 6 }
   0xf   : > { %s164_s21 = scalar_lea.vmem %s2879_s0, %s1825_s18 }
  0x10   : > { %v2367_v3 = vld [vmem:[%s164_s21 + $0x28] sm:$0xff]  ;;  %v2369_v4 = vld [vmem:[%s164_s21 + $0x30] sm:$0xff]  ;;  %v2375_v8 = vld [vmem:[%s164_s21 + $0x18] sm:$0xff] }
  0x11   : > { %v171_v5 = vld [vmem:[%s164_s21 + $0x8] sm:$0xff]  ;;  %v2037_v6 = vpack.i.bf16 %v2369_v4, %v2367_v3  ;;  %v2373_v7 = vld [vmem:[%s164_s21 + $0x10] sm:$0xff]  ;;  %v177_v10 = vld [vmem:[%s164_s21 + $0x38] sm:$0xff] }
  0x12   : > { %v2027_v9 = vpack.i.bf16 %v2373_v7, %v171_v5  ;;  %v174_v11 = vld [vmem:[%s164_s21 + $0x20] sm:$0xff]  ;;  %v2052_v15 = vpack.i.bf16 %v2375_v8, %v2373_v7  ;;  %v2127_v17 = vpack.i.bf16 %v177_v10, %v2369_v4 }
  0x13   : > { %2038 = vrot.lane.b32.xlu1 %v2037_v6, %s2314_s22  ;;  %v170_v12 = vld [vmem:[%s164_s21] sm:$0xff]  ;;  %v2032_v13 = vpack.i.bf16 %v174_v11, %v2375_v8  ;;  %v2062_v16 = vpack.i.bf16 %v2367_v3, %v174_v11 }
  0x14   : > { %2028 = vrot.lane.b32.xlu0 %v2027_v9, %s2314_s22  ;;  %v2042_v14 = vpack.i.bf16 %v171_v5, %v170_v12 }
  0x17   : > { %201 = vrot.lane.b32.xlu1 %v177_v10, %s2314_s22 }
  0x18   : > { %2033 = vrot.lane.b32.xlu0 %v2032_v13, %s2314_s22 }
  0x1b   : > { %2048 = vrot.lane.b32.xlu1 %v2027_v9, %s2315_s23 }
  0x1c   : > { %2043 = vrot.lane.b32.xlu0 %v2042_v14, %s2316_s24 }
  0x1f   : > { %2058 = vrot.lane.b32.xlu1 %v2032_v13, %s2315_s23 }
  0x20   : > { %2053 = vrot.lane.b32.xlu0 %v2052_v15, %s2316_s24 }
  0x23   : > { %2068 = vrot.lane.b32.xlu1 %v2037_v6, %s2315_s23 }
  0x24   : > { %2063 = vrot.lane.b32.xlu0 %v2062_v16, %s2316_s24 }
  0x27   : > { %252 = vrot.lane.b32.xlu1 %v177_v10, %s2315_s23 }
  0x28   : > { %231 = vrot.lane.b32.xlu0 %v2369_v4, %s2316_s24 }
  0x2b   : > { %2078 = vrot.lane.b32.xlu1 %v2027_v9, %s2317_s25 }
  0x2c   : > { %2073 = vrot.lane.b32.xlu0 %v2042_v14, %s2318_s26 }
  0x2f   : > { %2088 = vrot.lane.b32.xlu1 %v2032_v13, %s2317_s25 }
  0x30   : > { %2083 = vrot.lane.b32.xlu0 %v2052_v15, %s2318_s26 }
  0x33   : > { %2098 = vrot.lane.b32.xlu1 %v2037_v6, %s2317_s25 }
  0x34   : > { %2093 = vrot.lane.b32.xlu0 %v2062_v16, %s2318_s26 }
  0x37   : > { %302 = vrot.lane.b32.xlu1 %v177_v10, %s2317_s25 }
  0x38   : > { %281 = vrot.lane.b32.xlu0 %v2369_v4, %s2318_s26 }
  0x3b   : > { %2108 = vrot.lane.b32.xlu1 %v2027_v9, %s2319_s27 }
  0x3c   : > { %2103 = vrot.lane.b32.xlu0 %v2042_v14, %s2320_s28 }
  0x3f   : > { %344 = vrot.lane.b32.xlu1 %v2375_v8, %s2319_s27 }
  0x40   : > { %2113 = vrot.lane.b32.xlu0 %v2052_v15, %s2320_s28 }
  0x43   : > { %2123 = vrot.lane.b32.xlu1 %v2062_v16, %s2319_s27 }
  0x44   : > { %2118 = vrot.lane.b32.xlu0 %v2062_v16, %s2320_s28 }
  0x47   : > { %2128 = vrot.lane.b32.xlu1 %v2127_v17, %s2319_s27  ;;  %s2324_s27 = smov 64  }
  0x48   : > { %331 = vrot.lane.b32.xlu0 %v2369_v4, %s2320_s28  ;;  %s2325_s28 = smov 32  }
  0x85   : > { %v2039_v18 = vpop.permute.xlu1 %2038 }
  0x86   : > { %v2029_v19 = vpop.permute.xlu0 %2028  ;;  %v2041_v22 = vunpack.i.h.bf16 %v2039_v18  ;;  %v2040_v23 = vunpack.i.l.bf16 %v2039_v18 }
  0x87   : > { %v2031_v20 = vunpack.i.h.bf16 %v2029_v19  ;;  %v2030_v21 = vunpack.i.l.bf16 %v2029_v19 }
  0x88   : > { %v216_v31 = vsel %vm210_vm1, %v2367_v3, %v2041_v22  ;;  %v215_v32 = vsel %vm210_vm1, %v174_v11, %v2040_v23 }
  0x89   : > { %v202_v24 = vpop.permute.xlu1 %201  ;;  %v211_v25 = vsel %vm210_vm1, %v170_v12, %v2030_v21  ;;  %v212_v26 = vsel %vm210_vm1, %v171_v5, %v2031_v20  ;;  %v371_v38 = vpack.c.bf16 %v216_v31, %v215_v32 }
  0x8a   : > { %v2034_v27 = vpop.permute.xlu0 %2033  ;;  %v369_v28 = vpack.c.bf16 %v212_v26, %v211_v25  ;;  %v217_v48 = vsel %vm210_vm1, %v2369_v4, %v202_v24 }
  0x8b   : > { %v2036_v29 = vunpack.i.h.bf16 %v2034_v27  ;;  %v2035_v30 = vunpack.i.l.bf16 %v2034_v27 }
  0x8c   : > { %1876 = vmatprep.mubr.msk.bf16.mxu0 %vm399_vm2, %v369_v28 }
  0x8d   : > { %v214_v33 = vsel %vm210_vm1, %v2375_v8, %v2036_v29  ;;  %v213_v34 = vsel %vm210_vm1, %v2373_v7, %v2035_v30  ;;  %v2049_v35 = vpop.permute.xlu1 %2048 }
  0x8e   : > { %v370_v36 = vpack.c.bf16 %v214_v33, %v213_v34  ;;  %v2044_v37 = vpop.permute.xlu0 %2043  ;;  %v2050_v39 = vunpack.i.l.bf16 %v2049_v35  ;;  %v2051_v41 = vunpack.i.h.bf16 %v2049_v35 }
  0x8f   : > { %v2045_v40 = vunpack.i.l.bf16 %v2044_v37  ;;  %v2046_v42 = vunpack.i.h.bf16 %v2044_v37 }
  0x90   : > { %1877 = vmatmul.mubr.msk.bf16.vlgmr.msra.gmra.mrb[0].mxu0 %vm399_vm2, %v370_v36 }
  0x91   : > { %1880 = vmatprep.mubr.msk.bf16.mxu0 %vm399_vm2, %v371_v38  ;;  %v2059_v43 = vpop.permute.xlu1 %2058  ;;  %v262_v46 = vsel %vm261_vm3, %v2045_v40, %v2050_v39  ;;  %v263_v49 = vsel %vm261_vm3, %v2046_v42, %v2051_v41 }
  0x92   : > { %v2060_v44 = vunpack.i.l.bf16 %v2059_v43  ;;  %v2054_v45 = vpop.permute.xlu0 %2053  ;;  %v372_v52 = vpack.c.bf16 %v262_v46, %v217_v48  ;;  %v2061_v57 = vunpack.i.h.bf16 %v2059_v43 }
  0x93   : > { %v2055_v47 = vunpack.i.l.bf16 %v2054_v45  ;;  %v2056_v58 = vunpack.i.h.bf16 %v2054_v45 }
  0x95   : > { %v264_v50 = vsel %vm261_vm3, %v2055_v47, %v2060_v44  ;;  %v2069_v51 = vpop.permute.xlu1 %2068  ;;  %v265_v1 = vsel %vm261_vm3, %v2056_v58, %v2061_v57 }
  0x96   : > { %v373_v53 = vpack.c.bf16 %v264_v50, %v263_v49  ;;  %v2064_v54 = vpop.permute.xlu0 %2063  ;;  %v2070_v55 = vunpack.i.l.bf16 %v2069_v51  ;;  %v2071_v59 = vunpack.i.h.bf16 %v2069_v51 }
  0x97   : > { %v2065_v56 = vunpack.i.l.bf16 %v2064_v54  ;;  %v2066_v60 = vunpack.i.h.bf16 %v2064_v54 }
  0x98   : > { %1881 = vmatmul.mubr.msk.bf16.gmra.mrb[4].mxu0 %vm399_vm2, %v372_v52 }
  0x99   : > { %1884 = vmatprep.mubr.msk.bf16.mxu0 %vm399_vm2, %v373_v53  ;;  %v253_v61 = vpop.permute.xlu1 %252  ;;  %v266_v63 = vsel %vm261_vm3, %v2065_v56, %v2070_v55  ;;  %v267_v2 = vsel %vm261_vm3, %v2066_v60, %v2071_v59 }
  0x9a   : > { %v232_v62 = vpop.permute.xlu0 %231  ;;  %v374_v4 = vpack.c.bf16 %v266_v63, %v265_v1 }
  0x9b   : > { %v268_v0 = vsel %vm261_vm3, %v232_v62, %v253_v61 }
  0x9c   : > { %v375_v5 = vpack.c.bf16 %v268_v0, %v267_v2 }
  0x9d   : > { %v2079_v3 = vpop.permute.xlu1 %2078 }
  0x9e   : > { %v2074_v6 = vpop.permute.xlu0 %2073  ;;  %v2081_v7 = vunpack.i.h.bf16 %v2079_v3  ;;  %v2080_v8 = vunpack.i.l.bf16 %v2079_v3 }
  0x9f   : > { %v2076_v9 = vunpack.i.h.bf16 %v2074_v6  ;;  %v2075_v10 = vunpack.i.l.bf16 %v2074_v6  ;;  %v2436_v6 = vld [vmem:[%s2881_s2] ss:$0 sm:$0xff] }
  0xa0   : > { %1885 = vmatmul.mubr.msk.bf16.gmra.mrb[8].mxu0 %vm399_vm2, %v374_v4 }
  0xa1   : > { %1888 = vmatprep.mubr.msk.bf16.mxu0 %vm399_vm2, %v375_v5  ;;  %v2089_v11 = vpop.permute.xlu1 %2088  ;;  %v313_v15 = vsel %vm311_vm4, %v2076_v9, %v2081_v7  ;;  %v312_v16 = vsel %vm311_vm4, %v2075_v10, %v2080_v8 }
  0xa2   : > { %v2091_v12 = vunpack.i.h.bf16 %v2089_v11  ;;  %v2090_v13 = vunpack.i.l.bf16 %v2089_v11  ;;  %v2084_v14 = vpop.permute.xlu0 %2083  ;;  %v376_v22 = vpack.c.bf16 %v313_v15, %v312_v16 }
  0xa3   : > { %v2086_v17 = vunpack.i.h.bf16 %v2084_v14  ;;  %v2085_v18 = vunpack.i.l.bf16 %v2084_v14 }
  0xa5   : > { %v315_v19 = vsel %vm311_vm4, %v2086_v17, %v2091_v12  ;;  %v314_v20 = vsel %vm311_vm4, %v2085_v18, %v2090_v13  ;;  %v2099_v21 = vpop.permute.xlu1 %2098 }
  0xa6   : > { %v377_v23 = vpack.c.bf16 %v315_v19, %v314_v20  ;;  %v2094_v24 = vpop.permute.xlu0 %2093  ;;  %v2101_v25 = vunpack.i.h.bf16 %v2099_v21  ;;  %v2100_v26 = vunpack.i.l.bf16 %v2099_v21 }
  0xa7   : > { %v2096_v27 = vunpack.i.h.bf16 %v2094_v24  ;;  %v2095_v28 = vunpack.i.l.bf16 %v2094_v24 }
  0xa8   : > { %1889 = vmatmul.mubr.msk.bf16.gmra.mrb[12].mxu0 %vm399_vm2, %v376_v22 }
  0xa9   : > { %1892 = vmatprep.mubr.msk.bf16.mxu0 %vm399_vm2, %v377_v23  ;;  %v303_v29 = vpop.permute.xlu1 %302  ;;  %v317_v31 = vsel %vm311_vm4, %v2096_v27, %v2101_v25  ;;  %v316_v32 = vsel %vm311_vm4, %v2095_v28, %v2100_v26 }
  0xaa   : > { %v282_v30 = vpop.permute.xlu0 %281  ;;  %v378_v34 = vpack.c.bf16 %v317_v31, %v316_v32 }
  0xab   : > { %v318_v38 = vsel %vm311_vm4, %v282_v30, %v303_v29 }
  0xad   : > { %v2109_v33 = vpop.permute.xlu1 %2108 }
  0xae   : > { %v2110_v35 = vunpack.i.l.bf16 %v2109_v33  ;;  %v2104_v36 = vpop.permute.xlu0 %2103  ;;  %v2111_v39 = vunpack.i.h.bf16 %v2109_v33 }
  0xaf   : > { %v2105_v37 = vunpack.i.l.bf16 %v2104_v36  ;;  %v2106_v40 = vunpack.i.h.bf16 %v2104_v36 }
  0xb0   : > { %1893 = vmatmul.mubr.msk.bf16.gmra.mrb[16].mxu0 %vm399_vm2, %v378_v34 }
  0xb1   : > { %v362_v41 = vsel %vm361_vm5, %v2105_v37, %v2110_v35  ;;  %v345_v42 = vpop.permute.xlu1 %344  ;;  %v363_v46 = vsel %vm361_vm5, %v2106_v40, %v2111_v39 }
  0xb2   : > { %v379_v43 = vpack.c.bf16 %v362_v41, %v318_v38  ;;  %v2114_v44 = vpop.permute.xlu0 %2113 }
  0xb3   : > { %v2115_v45 = vunpack.i.l.bf16 %v2114_v44  ;;  %v2116_v49 = vunpack.i.h.bf16 %v2114_v44 }
  0xb4   : > { %1896 = vmatprep.mubr.msk.bf16.mxu0 %vm399_vm2, %v379_v43 }
  0xb5   : > { %v364_v47 = vsel %vm361_vm5, %v2115_v45, %v345_v42  ;;  %v2124_v48 = vpop.permute.xlu1 %2123 }
  0xb6   : > { %v380_v50 = vpack.c.bf16 %v364_v47, %v363_v46  ;;  %v2126_v51 = vunpack.i.h.bf16 %v2124_v48  ;;  %v2125_v52 = vunpack.i.l.bf16 %v2124_v48  ;;  %v2119_v53 = vpop.permute.xlu0 %2118 }
  0xb7   : > { %v2120_v54 = vunpack.i.l.bf16 %v2119_v53  ;;  %v2121_v56 = vunpack.i.h.bf16 %v2119_v53 }
  0xb8   : > { %v365_v55 = vsel %vm361_vm5, %v2116_v49, %v2125_v52  ;;  %1897 = vmatmul.mubr.msk.bf16.gmra.mrb[20].mxu0 %vm399_vm2, %v380_v50 }
  0xb9   : > { %v366_v57 = vsel %vm361_vm5, %v2120_v54, %v2126_v51  ;;  %v2129_v58 = vpop.permute.xlu1 %2128 }
  0xba   : > { %v381_v59 = vpack.c.bf16 %v366_v57, %v365_v55  ;;  %v2131_v60 = vunpack.i.h.bf16 %v2129_v58  ;;  %v2130_v61 = vunpack.i.l.bf16 %v2129_v58  ;;  %v332_v62 = vpop.permute.xlu0 %331 }
  0xbc   : > { %v367_v63 = vsel %vm361_vm5, %v2121_v56, %v2130_v61  ;;  %v368_v0 = vsel %vm361_vm5, %v332_v62, %v2131_v60  ;;  %1900 = vmatprep.mubr.msk.bf16.mxu0 %vm399_vm2, %v381_v59  ;;  %v2321_v60 = vmov 0.0  }
  0xbd   : > { %v382_v1 = vpack.c.bf16 %v368_v0, %v367_v63  ;;  %1904 = vmatprep.subr.bf16.mxu0 %v2321_v60 }
  0xc0   : > { %1901 = vmatmul.mubr.msk.bf16.gmra.mrb[24].mxu0 %vm399_vm2, %v382_v1 }
  0xc1   : > { %1908 = vmatprep.mubr.msk.bf16.mxu0 %vm2326_vm9, %v2321_v60 }
 0x163   : > { %v1878_v2 = vpop.f32.mrb[0].mxu0 }
 0x164   : > { %v480_v3 = vpop.f32.mrb[1].mxu0  ;;  %v489_v22 = vadd.f32 %v1878_v2, %v2436_v6 }
 0x165   : > { %v1879_v4 = vpop.f32.mrb[2].mxu0  ;;  %v481_v8 = vadd.f32 %v2436_v6, %v480_v3 }
 0x166   : > { %v483_v5 = vpop.f32.mrb[3].mxu0  ;;  %v492_v15 = vadd.f32 %v1879_v4, %v2436_v6  ;;  %v593_v35 = vmax.f32 %v489_v22, 0.0 }
 0x167   : > { %v591_v13 = vmax.f32 %v481_v8, 0.0  ;;  %v484_v17 = vadd.f32 %v2436_v6, %v483_v5 }
 0x168   : > { %v594_v25 = vmax.f32 %v492_v15, 0.0 }
 0x169   : > { %v592_v29 = vmax.f32 %v484_v17, 0.0 }
 0x16b   : > { %v1882_v7 = vpop.f32.mrb[4].mxu0 }
 0x16c   : > { %v496_v9 = vpop.f32.mrb[5].mxu0  ;;  %v505_v43 = vadd.f32 %v1882_v7, %v2436_v6 }
 0x16d   : > { %v1883_v10 = vpop.f32.mrb[6].mxu0  ;;  %v497_v19 = vadd.f32 %v2436_v6, %v496_v9 }
 0x16e   : > { %v508_v11 = vadd.f32 %v1883_v10, %v2436_v6  ;;  %v499_v12 = vpop.f32.mrb[7].mxu0  ;;  %v597_v50 = vmax.f32 %v505_v43, 0.0 }
 0x16f   : > { %v595_v32 = vmax.f32 %v497_v19, 0.0  ;;  %v500_v39 = vadd.f32 %v2436_v6, %v499_v12 }
 0x170   : > { %v598_v14 = vmax.f32 %v508_v11, 0.0 }
 0x171   : > { %v596_v47 = vmax.f32 %v500_v39, 0.0 }
 0x172   : > { %v2441_v16 = vmax.f32 %v591_v13, %v598_v14 }
 0x173   : > { %v1886_v18 = vpop.f32.mrb[8].mxu0 }
 0x174   : > { %v521_v20 = vadd.f32 %v1886_v18, %v2436_v6  ;;  %v512_v21 = vpop.f32.mrb[9].mxu0 }
 0x175   : > { %v513_v23 = vadd.f32 %v2436_v6, %v512_v21  ;;  %v1887_v24 = vpop.f32.mrb[10].mxu0 }
 0x176   : > { %v601_v26 = vmax.f32 %v521_v20, 0.0  ;;  %v524_v27 = vadd.f32 %v1887_v24, %v2436_v6  ;;  %v515_v28 = vpop.f32.mrb[11].mxu0 }
 0x177   : > { %v599_v30 = vmax.f32 %v513_v23, 0.0  ;;  %v516_v31 = vadd.f32 %v2436_v6, %v515_v28 }
 0x178   : > { %v2450_v33 = vmax.f32 %v594_v25, %v601_v26  ;;  %v602_v34 = vmax.f32 %v524_v27, 0.0 }
 0x179   : > { %v2452_v36 = vmax.f32 %v592_v29, %v599_v30  ;;  %v600_v37 = vmax.f32 %v516_v31, 0.0 }
 0x17a   : > { %v2454_v38 = vmax.f32 %v595_v32, %v602_v34 }
 0x17b   : > { %v2457_v40 = vmax.f32 %v593_v35, %v600_v37  ;;  %v1890_v41 = vpop.f32.mrb[12].mxu0 }
 0x17c   : > { %v528_v42 = vpop.f32.mrb[13].mxu0  ;;  %v537_v0 = vadd.f32 %v1890_v41, %v2436_v6 }
 0x17d   : > { %v529_v44 = vadd.f32 %v2436_v6, %v528_v42  ;;  %v1891_v45 = vpop.f32.mrb[14].mxu0 }
 0x17e   : > { %v531_v46 = vpop.f32.mrb[15].mxu0  ;;  %v540_v58 = vadd.f32 %v1891_v45, %v2436_v6  ;;  %v605_v11 = vmax.f32 %v537_v0, 0.0 }
 0x17f   : > { %v603_v48 = vmax.f32 %v529_v44, 0.0  ;;  %v532_v49 = vadd.f32 %v2436_v6, %v531_v46 }
 0x180   : > { %v606_v2 = vmax.f32 %v540_v58, 0.0  ;;  %v2279_v58 = vld [vmem:[%s2880_s1 + $0xd8] sm:$0xff]  }
 0x181   : > { %v2462_v51 = vmax.f32 %v596_v47, %v603_v48  ;;  %v604_v52 = vmax.f32 %v532_v49, 0.0 }
 0x183   : > { %v2464_v53 = vmax.f32 %v597_v50, %v604_v52  ;;  %v1894_v54 = vpop.f32.mrb[16].mxu0  ;;  %v2274_v50 = vld [vmem:[%s2880_s1 + $0xb0] sm:$0xff]   ;;  %v2323_v52 = vmov 0  }
 0x184   : > { %v544_v55 = vpop.f32.mrb[17].mxu0  ;;  %v553_v23 = vadd.f32 %v1894_v54, %v2436_v6  ;;  %1008 = vmatprep.subr.bf16.mxu1 %v2323_v52  ;;  %v2275_v54 = vld [vmem:[%s2880_s1 + $0xb8] sm:$0xff]  }
 0x185   : > { %v1895_v56 = vpop.f32.mrb[18].mxu0  ;;  %v545_v61 = vadd.f32 %v2436_v6, %v544_v55  ;;  %1009 = vmatpush1.bf16.msra.mxu1 %v2274_v50  ;;  %v2276_v55 = vld [vmem:[%s2880_s1 + $0xc0] sm:$0xff]  }
 0x186   : > { %v547_v57 = vpop.f32.mrb[19].mxu0  ;;  %v556_v13 = vadd.f32 %v1895_v56, %v2436_v6  ;;  %v609_v41 = vmax.f32 %v553_v23, 0.0  ;;  %1010 = vmatprep.subr.bf16.mxu1 %v2323_v52  ;;  %v2277_v56 = vld [vmem:[%s2880_s1 + $0xc8] sm:$0xff]  }
 0x187   : > { %v607_v8 = vmax.f32 %v545_v61, 0.0  ;;  %v548_v17 = vadd.f32 %v2436_v6, %v547_v57  ;;  %v2278_v57 = vld [vmem:[%s2880_s1 + $0xd0] sm:$0xff]   ;;  %v2281_v61 = vld [vmem:[%s2880_s1 + $0xe8] sm:$0xff]  }
 0x188   : > { %v610_v27 = vmax.f32 %v556_v13, 0.0 }
 0x189   : > { %v608_v31 = vmax.f32 %v548_v17, 0.0  ;;  %1011 = vmatpush1.bf16.msra.mxu1 %v2275_v54 }
 0x18a   : > { %1012 = vmatprep.subr.bf16.mxu1 %v2323_v52 }
 0x18b   : > { %v1898_v59 = vpop.f32.mrb[20].mxu0 }
 0x18c   : > { %v569_v62 = vadd.f32 %v1898_v59, %v2436_v6  ;;  %v560_v63 = vpop.f32.mrb[21].mxu0  ;;  %v2280_v59 = vld [vmem:[%s2880_s1 + $0xe0] sm:$0xff]  }
 0x18d   : > { %v1899_v1 = vpop.f32.mrb[22].mxu0  ;;  %v561_v20 = vadd.f32 %v2436_v6, %v560_v63  ;;  %1013 = vmatpush1.bf16.msra.mxu1 %v2276_v55 }
 0x18e   : > { %v613_v3 = vmax.f32 %v569_v62, 0.0  ;;  %v572_v4 = vadd.f32 %v1899_v1, %v2436_v6  ;;  %v563_v5 = vpop.f32.mrb[23].mxu0  ;;  %1014 = vmatprep.subr.bf16.mxu1 %v2323_v52  ;;  %v2282_v62 = vld [vmem:[%s2880_s1 + $0xf0] sm:$0xff]   ;;  %v2283_v1 = vld [vmem:[%s2880_s1 + $0xf8] sm:$0xff]  }
 0x18f   : > { %v564_v7 = vadd.f32 %v2436_v6, %v563_v5  ;;  %v611_v35 = vmax.f32 %v561_v20, 0.0 }
 0x190   : > { %v2473_v9 = vmax.f32 %v606_v2, %v613_v3  ;;  %v614_v10 = vmax.f32 %v572_v4, 0.0 }
 0x191   : > { %v612_v12 = vmax.f32 %v564_v7, 0.0  ;;  %1015 = vmatpush1.bf16.msra.mxu1 %v2277_v56 }
 0x192   : > { %v2476_v14 = vmax.f32 %v607_v8, %v614_v10  ;;  %v2137_v15 = vpack.i.bf16 %v2473_v9, %v2452_v36  ;;  %1016 = vmatprep.subr.bf16.mxu1 %v2323_v52 }
 0x193   : > { %v2481_v18 = vmax.f32 %v605_v11, %v612_v12  ;;  %v1902_v19 = vpop.f32.mrb[24].mxu0 }
 0x194   : > { %v585_v21 = vadd.f32 %v1902_v19, %v2436_v6  ;;  %v576_v22 = vpop.f32.mrb[25].mxu0  ;;  %2138 = vrot.lane.b32.xlu1 %v2137_v15, %s2322_s4  ;;  %v2142_v44 = vpack.i.bf16 %v2457_v40, %v2476_v14 }
 0x195   : > { %v577_v24 = vadd.f32 %v2436_v6, %v576_v22  ;;  %v1903_v25 = vpop.f32.mrb[26].mxu0  ;;  %v2132_v26 = vpack.i.bf16 %v2441_v16, %v2481_v18  ;;  %1017 = vmatpush1.bf16.msra.mxu1 %v2278_v57 }
 0x196   : > { %v617_v28 = vmax.f32 %v585_v21, 0.0  ;;  %v588_v29 = vadd.f32 %v1903_v25, %v2436_v6  ;;  %v579_v30 = vpop.f32.mrb[27].mxu0  ;;  %1018 = vmatprep.subr.bf16.mxu1 %v2323_v52 }
 0x197   : > { %v615_v32 = vmax.f32 %v577_v24, 0.0  ;;  %v580_v34 = vadd.f32 %v2436_v6, %v579_v30  ;;  %2133 = vrot.lane.b32.xlu0 %v2132_v26, %s2322_s4 }
 0x198   : > { %v2493_v37 = vmax.f32 %v610_v27, %v617_v28  ;;  %v618_v39 = vmax.f32 %v588_v29, 0.0 }
 0x199   : > { %v2495_v42 = vmax.f32 %v608_v31, %v615_v32  ;;  %v616_v43 = vmax.f32 %v580_v34, 0.0  ;;  %1019 = vmatpush1.bf16.msra.mxu1 %v2279_v58 }
 0x19a   : > { %v2499_v45 = vmax.f32 %v611_v35, %v618_v39  ;;  %v2157_v48 = vpack.i.bf16 %v2493_v37, %v2462_v51  ;;  %1020 = vmatprep.subr.bf16.mxu1 %v2323_v52 }
 0x19b   : > { %v2501_v46 = vmax.f32 %v609_v41, %v616_v43  ;;  %2143 = vrot.lane.b32.xlu0 %v2142_v44, %s2322_s4  ;;  %v2147_v6 = vpack.i.bf16 %v2495_v42, %v2450_v33 }
 0x19c   : > { %v2162_v49 = vpack.i.bf16 %v2499_v45, %v2464_v53 }
 0x19d   : > { %2148 = vrot.lane.b32.xlu1 %v2147_v6, %s2322_s4  ;;  %v2152_v47 = vpack.i.bf16 %v2454_v38, %v2501_v46  ;;  %1021 = vmatpush1.bf16.msra.mxu1 %v2280_v59 }
 0x19e   : > { %1022 = vmatprep.subr.bf16.mxu1 %v2323_v52 }
 0x19f   : > { %2153 = vrot.lane.b32.xlu0 %v2152_v47, %s2322_s4 }
 0x1a1   : > { %2158 = vrot.lane.b32.xlu1 %v2157_v48, %s2322_s4  ;;  %1023 = vmatpush1.bf16.msra.mxu1 %v2281_v61 }
 0x1a2   : > { %1024 = vmatprep.subr.bf16.mxu1 %v2323_v52 }
 0x1a3   : > { %2163 = vrot.lane.b32.xlu0 %v2162_v49, %s2322_s4 }
 0x1a5   : > { %1025 = vmatpush1.bf16.msra.mxu1 %v2282_v62 }
 0x1a6   : > { %1026 = vmatprep.subr.bf16.mxu1 %v2323_v52 }
 0x1a9   : > { %1027 = vmatpush1.bf16.msra.mxu1 %v2283_v1 }
 0x1aa   : > { %1960 = vmatprep.subr.bf16.mxu1 %v2321_v60 }
 0x206   : > { %v2139_v63 = vpop.permute.xlu1 %2138 }
 0x207   : > { %v2140_v0 = vunpack.i.l.bf16 %v2139_v63  ;;  %v2141_v5 = vunpack.i.h.bf16 %v2139_v63 }
 0x209   : > { %v2134_v2 = vpop.permute.xlu0 %2133  ;;  %v2548_v7 = vmax.f32 %v2452_v36, %v2140_v0  ;;  %v2561_v19 = vmax.f32 %v2473_v9, %v2141_v5 }
 0x20a   : > { %v2136_v3 = vunpack.i.h.bf16 %v2134_v2  ;;  %v2135_v4 = vunpack.i.l.bf16 %v2134_v2 }
 0x20c   : > { %v2551_v8 = vmax.f32 %v2441_v16, %v2136_v3  ;;  %v2554_v10 = vmax.f32 %v2481_v18, %v2135_v4 }
 0x20d   : > { %v2144_v11 = vpop.permute.xlu0 %2143 }
 0x20e   : > { %v2146_v12 = vunpack.i.h.bf16 %v2144_v11  ;;  %v2145_v13 = vunpack.i.l.bf16 %v2144_v11  ;;  %v2167_v15 = vpack.i.bf16 %v2548_v7, %v2551_v8  ;;  %v2172_v17 = vpack.i.bf16 %v2554_v10, %v2321_v60 }
 0x20f   : > { %v2149_v36 = vpop.permute.xlu1 %2148 }
 0x210   : > { %v2564_v20 = vmax.f32 %v2457_v40, %v2146_v12  ;;  %v2567_v16 = vmax.f32 %v2476_v14, %v2145_v13  ;;  %v2151_v18 = vunpack.i.h.bf16 %v2149_v36  ;;  %v2150_v21 = vunpack.i.l.bf16 %v2149_v36  ;;  %2168 = vrot.lane.b32.xlu0 %v2167_v15, %s2324_s27  ;;  %2173 = vrot.lane.b32.xlu1 %v2172_v17, %s2325_s28 }
 0x211   : > { %v2154_v22 = vpop.permute.xlu0 %2153  ;;  %v2177_v40 = vpack.i.bf16 %v2561_v19, %v2554_v10 }
 0x212   : > { %v2572_v23 = vmax.f32 %v2450_v33, %v2150_v21  ;;  %v2155_v9 = vunpack.i.l.bf16 %v2154_v22  ;;  %v2577_v14 = vmax.f32 %v2495_v42, %v2151_v18  ;;  %v890_v25 = vpack.c.bf16 %v2564_v20, %v2548_v7 }
 0x213   : > { %v2159_v24 = vpop.permute.xlu1 %2158  ;;  %v2182_v26 = vpack.i.bf16 %v2567_v16, %v2561_v19  ;;  %v2156_v33 = vunpack.i.h.bf16 %v2154_v22 }
 0x214   : > { %v2160_v27 = vunpack.i.l.bf16 %v2159_v24  ;;  %2178 = vrot.lane.b32.xlu1 %v2177_v40, %s2322_s4  ;;  %1785 = vmatprep.mubr.msk.bf16.mxu1 %vm781_vm6, %v890_v25  ;;  %v2587_v28 = vmax.f32 %v2501_v46, %v2155_v9  ;;  %v2161_v29 = vunpack.i.h.bf16 %v2159_v24  ;;  %v2187_v30 = vpack.i.bf16 %v2572_v23, %v2564_v20 }
 0x215   : > { %2183 = vrot.lane.b32.xlu0 %v2182_v26, %s2325_s28  ;;  %v2164_v32 = vpop.permute.xlu0 %2163  ;;  %v2192_v34 = vpack.i.bf16 %v2577_v14, %v2567_v16  ;;  %v2598_v35 = vmax.f32 %v2454_v38, %v2156_v33 }
 0x216   : > { %v2592_v31 = vmax.f32 %v2462_v51, %v2160_v27  ;;  %v2602_v39 = vmax.f32 %v2493_v37, %v2161_v29  ;;  %v2165_v41 = vunpack.i.l.bf16 %v2164_v32  ;;  %v2202_v42 = vpack.i.bf16 %v2587_v28, %v2577_v14 }
 0x217   : > { %v2166_v51 = vunpack.i.h.bf16 %v2164_v32  ;;  %v2242_v47 = vpack.i.bf16 %v2598_v35, %v2572_v23  ;;  %v892_v18 = vpack.c.bf16 %v2598_v35, %v2572_v23 }
 0x218   : > { %2188 = vrot.lane.b32.xlu1 %v2187_v30, %s2324_s27  ;;  %v2197_v43 = vpack.i.bf16 %v2592_v31, %v2598_v35  ;;  %v2611_v38 = vmax.f32 %v2464_v53, %v2165_v41  ;;  %v2207_v44 = vpack.i.bf16 %v2602_v39, %v2587_v28  ;;  %v2212_v46 = vpack.i.bf16 %v2551_v8, %v2602_v39 }
 0x219   : > { %2193 = vrot.lane.b32.xlu0 %v2192_v34, %s2322_s4  ;;  %v2616_v37 = vmax.f32 %v2499_v45, %v2166_v51  ;;  %v2227_v45 = vpack.i.bf16 %v2564_v20, %v2548_v7 }
 0x21a   : > { %v2217_v6 = vpack.i.bf16 %v2554_v10, %v2611_v38  ;;  %v2257_v48 = vpack.i.bf16 %v2611_v38, %v2592_v31  ;;  %v2267_v50 = vpack.i.bf16 %v2321_v60, %v2611_v38 }
 0x21b   : > { %v2222_v53 = vpack.i.bf16 %v2548_v7, %v2616_v37  ;;  %v2262_v49 = vpack.i.bf16 %v2616_v37, %v2602_v39 }
 0x21c   : > { %2203 = vrot.lane.b32.xlu1 %v2202_v42, %s2325_s28 }
 0x21d   : > { %2198 = vrot.lane.b32.xlu0 %v2197_v43, %s2324_s27 }
 0x220   : > { %2208 = vrot.lane.b32.xlu1 %v2207_v44, %s2322_s4 }
 0x221   : > { %2213 = vrot.lane.b32.xlu0 %v2212_v46, %s2325_s28 }
 0x224   : > { %2218 = vrot.lane.b32.xlu1 %v2217_v6, %s2324_s27 }
 0x225   : > { %2223 = vrot.lane.b32.xlu0 %v2222_v53, %s2322_s4 }
 0x228   : > { %2228 = vrot.lane.b32.xlu1 %v2227_v45, %s2325_s28 }
 0x229   : > { %2233 = vrot.lane.b32.xlu0 %v2182_v26, %s2324_s27 }
 0x22c   : > { %2238 = vrot.lane.b32.xlu1 %v2187_v30, %s2322_s4 }
 0x22d   : > { %2243 = vrot.lane.b32.xlu0 %v2242_v47, %s2325_s28 }
 0x230   : > { %2248 = vrot.lane.b32.xlu1 %v2202_v42, %s2324_s27  ;;  %v894_v42 = vpack.c.bf16 %v2611_v38, %v2592_v31 }
 0x231   : > { %2253 = vrot.lane.b32.xlu0 %v2197_v43, %s2322_s4 }
 0x234   : > { %2258 = vrot.lane.b32.xlu1 %v2257_v48, %s2325_s28 }
 0x235   : > { %2263 = vrot.lane.b32.xlu0 %v2262_v49, %s2324_s27  ;;  %s1756_s27 = sshll.u32 %s2884_s13, 3 }
 0x236   : > { %s168_s6 = scalar_lea.vmem %s2882_s3, %s1756_s27 }
 0x238   : > { %2268 = vrot.lane.b32.xlu1 %v2267_v50, %s2322_s4 }
 0x282   : > { %v2169_v52 = vpop.permute.xlu0 %2168  ;;  %v2174_v54 = vpop.permute.xlu1 %2173 }
 0x283   : > { %v2176_v55 = vunpack.i.h.bf16 %v2174_v54  ;;  %v2175_v56 = vunpack.i.l.bf16 %v2174_v54  ;;  %v2171_v57 = vunpack.i.h.bf16 %v2169_v52  ;;  %v2170_v58 = vunpack.i.l.bf16 %v2169_v52 }
 0x285   : > { %v783_v59 = vsel %vm781_vm6, %v2551_v8, %v2176_v55  ;;  %v782_v61 = vsel %vm781_vm6, 0.0, %v2175_v56  ;;  %v896_v56 = vpack.c.bf16 %v2561_v19, %v2321_v60 }
 0x286   : > { %v2179_v62 = vpop.permute.xlu1 %2178  ;;  %v790_v2 = vsel %vm789_vm7, %v782_v61, %v2170_v58  ;;  %v791_v5 = vsel %vm789_vm7, %v783_v59, %v2171_v57 }
 0x287   : > { %v2184_v63 = vpop.permute.xlu0 %2183  ;;  %v2181_v0 = vunpack.i.h.bf16 %v2179_v62  ;;  %v2180_v1 = vunpack.i.l.bf16 %v2179_v62 }
 0x288   : > { %v2186_v3 = vunpack.i.h.bf16 %v2184_v63  ;;  %v2185_v4 = vunpack.i.l.bf16 %v2184_v63 }
 0x289   : > { %v798_v11 = vsel %vm797_vm8, %v790_v2, %v2180_v1  ;;  %v799_v12 = vsel %vm797_vm8, %v791_v5, %v2181_v0 }
 0x28a   : > { %v2189_v13 = vpop.permute.xlu1 %2188  ;;  %v889_v15 = vpack.c.bf16 %v799_v12, %v798_v11  ;;  %v785_v21 = vsel %vm781_vm6, %v2564_v20, %v2186_v3  ;;  %v784_v22 = vsel %vm781_vm6, %v2548_v7, %v2185_v4 }
 0x28b   : > { %v2194_v8 = vpop.permute.xlu0 %2193  ;;  %v2191_v17 = vunpack.i.h.bf16 %v2189_v13  ;;  %v2190_v36 = vunpack.i.l.bf16 %v2189_v13 }
 0x28c   : > { %v2196_v9 = vunpack.i.h.bf16 %v2194_v8  ;;  %v2195_v40 = vunpack.i.l.bf16 %v2194_v8  ;;  %1041 = vmatmul.mubr.bf16.vlgmr.msra.gmra.mrb[0].mxu1 %v889_v15  ;;  %v898_v15 = vpack.c.bf16 %v2577_v14, %v2567_v16 }
 0x28d   : > { %v793_v24 = vsel %vm789_vm7, %v785_v21, %v2191_v17  ;;  %v792_v25 = vsel %vm789_vm7, %v784_v22, %v2190_v36  ;;  %1786 = vmatprep.mubr.msk.bf16.mxu1 %vm781_vm6, %v892_v18 }
 0x28e   : > { %v2204_v26 = vpop.permute.xlu1 %2203  ;;  %v800_v30 = vsel %vm797_vm8, %v792_v25, %v2195_v40  ;;  %v801_v20 = vsel %vm797_vm8, %v793_v24, %v2196_v9 }
 0x28f   : > { %v2199_v27 = vpop.permute.xlu0 %2198  ;;  %v2206_v33 = vunpack.i.h.bf16 %v2204_v26  ;;  %v2205_v29 = vunpack.i.l.bf16 %v2204_v26  ;;  %v891_v41 = vpack.c.bf16 %v801_v20, %v800_v30  ;;  %v900_v30 = vpack.c.bf16 %v2602_v39, %v2587_v28 }
 0x290   : > { %v2201_v32 = vunpack.i.h.bf16 %v2199_v27  ;;  %v2200_v34 = vunpack.i.l.bf16 %v2199_v27 }
 0x291   : > { %v787_v51 = vsel %vm781_vm6, %v2598_v35, %v2206_v33  ;;  %v786_v43 = vsel %vm781_vm6, %v2572_v23, %v2205_v29 }
 0x292   : > { %v2209_v7 = vpop.permute.xlu1 %2208  ;;  %v794_v45 = vsel %vm789_vm7, %v786_v43, %v2200_v34  ;;  %v795_v47 = vsel %vm789_vm7, %v787_v51, %v2201_v32 }
 0x293   : > { %v2214_v44 = vpop.permute.xlu0 %2213  ;;  %v2211_v46 = vunpack.i.h.bf16 %v2209_v7  ;;  %v2210_v6 = vunpack.i.l.bf16 %v2209_v7 }
 0x294   : > { %1049 = vmatmul.mubr.bf16.gmra.mrb[4].mxu1 %v891_v41  ;;  %v2216_v48 = vunpack.i.h.bf16 %v2214_v44  ;;  %v2215_v49 = vunpack.i.l.bf16 %v2214_v44 }
 0x295   : > { %1787 = vmatprep.mubr.msk.bf16.mxu1 %vm781_vm6, %v894_v42  ;;  %v802_v50 = vsel %vm797_vm8, %v794_v45, %v2210_v6  ;;  %v803_v35 = vsel %vm797_vm8, %v795_v47, %v2211_v46  ;;  %v902_v47 = vpack.c.bf16 %v2321_v60, %v2616_v37 }
 0x296   : > { %v2219_v53 = vpop.permute.xlu1 %2218  ;;  %v893_v55 = vpack.c.bf16 %v803_v35, %v802_v50  ;;  %v868_v57 = vsel %vm781_vm6, 0.0, %v2216_v48  ;;  %v788_v58 = vsel %vm781_vm6, %v2592_v31, %v2215_v49 }
 0x297   : > { %v2224_v38 = vpop.permute.xlu0 %2223  ;;  %v2221_v52 = vunpack.i.h.bf16 %v2219_v53  ;;  %v2220_v23 = vunpack.i.l.bf16 %v2219_v53 }
 0x298   : > { %v2226_v59 = vunpack.i.h.bf16 %v2224_v38  ;;  %v2225_v61 = vunpack.i.l.bf16 %v2224_v38 }
 0x299   : > { %v875_v62 = vsel %vm789_vm7, %v868_v57, %v2221_v52  ;;  %v796_v63 = vsel %vm789_vm7, %v788_v58, %v2220_v23 }
 0x29a   : > { %v2229_v54 = vpop.permute.xlu1 %2228  ;;  %v804_v4 = vsel %vm797_vm8, %v796_v63, %v2225_v61  ;;  %v882_v5 = vsel %vm797_vm8, %v875_v62, %v2226_v59 }
 0x29b   : > { %v2234_v0 = vpop.permute.xlu0 %2233  ;;  %v2231_v2 = vunpack.i.h.bf16 %v2229_v54  ;;  %v2230_v3 = vunpack.i.l.bf16 %v2229_v54  ;;  %v895_v13 = vpack.c.bf16 %v882_v5, %v804_v4  ;;  %v1774_v4 = vld [vmem:[%s2881_s2 + $0x1] ss:$0 sm:$0xff] }
 0x29c   : > { %1057 = vmatmul.mubr.bf16.gmra.mrb[8].mxu1 %v893_v55  ;;  %v2236_v11 = vunpack.i.h.bf16 %v2234_v0  ;;  %v2235_v12 = vunpack.i.l.bf16 %v2234_v0 }
 0x29d   : > { %1788 = vmatprep.mubr.msk.bf16.mxu1 %vm781_vm6, %v896_v56  ;;  %v870_v8 = vsel %vm781_vm6, %v2561_v19, %v2231_v2  ;;  %v869_v17 = vsel %vm781_vm6, %v2554_v10, %v2230_v3 }
 0x29e   : > { %v2239_v1 = vpop.permute.xlu1 %2238  ;;  %v876_v22 = vsel %vm789_vm7, %v869_v17, %v2235_v12  ;;  %v877_v9 = vsel %vm789_vm7, %v870_v8, %v2236_v11 }
 0x29f   : > { %v2244_v31 = vpop.permute.xlu0 %2243  ;;  %v2241_v36 = vunpack.i.h.bf16 %v2239_v1  ;;  %v2240_v18 = vunpack.i.l.bf16 %v2239_v1 }
 0x2a0   : > { %v2246_v40 = vunpack.i.h.bf16 %v2244_v31  ;;  %v2245_v24 = vunpack.i.l.bf16 %v2244_v31 }
 0x2a1   : > { %v883_v25 = vsel %vm797_vm8, %v876_v22, %v2240_v18  ;;  %v884_v26 = vsel %vm797_vm8, %v877_v9, %v2241_v36 }
 0x2a2   : > { %v2249_v21 = vpop.permute.xlu1 %2248  ;;  %v897_v29 = vpack.c.bf16 %v884_v26, %v883_v25  ;;  %v872_v20 = vsel %vm781_vm6, %v2577_v14, %v2246_v40  ;;  %v871_v32 = vsel %vm781_vm6, %v2567_v16, %v2245_v24 }
 0x2a3   : > { %v2254_v19 = vpop.permute.xlu0 %2253  ;;  %v2251_v27 = vunpack.i.h.bf16 %v2249_v21  ;;  %v2250_v33 = vunpack.i.l.bf16 %v2249_v21 }
 0x2a4   : > { %1065 = vmatmul.mubr.bf16.gmra.mrb[12].mxu1 %v895_v13  ;;  %v2256_v34 = vunpack.i.h.bf16 %v2254_v19  ;;  %v2255_v7 = vunpack.i.l.bf16 %v2254_v19 }
 0x2a5   : > { %1789 = vmatprep.mubr.msk.bf16.mxu1 %vm781_vm6, %v898_v15  ;;  %v879_v41 = vsel %vm789_vm7, %v872_v20, %v2251_v27  ;;  %v878_v42 = vsel %vm789_vm7, %v871_v32, %v2250_v33 }
 0x2a6   : > { %v2259_v10 = vpop.permute.xlu1 %2258  ;;  %v885_v46 = vsel %vm797_vm8, %v878_v42, %v2255_v7  ;;  %v886_v6 = vsel %vm797_vm8, %v879_v41, %v2256_v34 }
 0x2a7   : > { %v2264_v51 = vpop.permute.xlu0 %2263  ;;  %v2261_v43 = vunpack.i.h.bf16 %v2259_v10  ;;  %v2260_v44 = vunpack.i.l.bf16 %v2259_v10  ;;  %v899_v16 = vpack.c.bf16 %v886_v6, %v885_v46 }
 0x2a8   : > { %v2266_v53 = vunpack.i.h.bf16 %v2264_v51  ;;  %v2265_v45 = vunpack.i.l.bf16 %v2264_v51 }
 0x2a9   : > { %v874_v48 = vsel %vm781_vm6, %v2602_v39, %v2261_v43  ;;  %v873_v49 = vsel %vm781_vm6, %v2587_v28, %v2260_v44  ;;  %v2284_v39 = vld [vmem:[%s2880_s1] sm:$0xff]   ;;  %v2285_v28 = vld [vmem:[%s2880_s1 + $0x8] sm:$0xff]  }
 0x2aa   : > { %v2269_v14 = vpop.permute.xlu1 %2268  ;;  %v880_v35 = vsel %vm789_vm7, %v873_v49, %v2265_v45  ;;  %v881_v52 = vsel %vm789_vm7, %v874_v48, %v2266_v53  ;;  %1905 = vmatpush3.bf16.msra.mxu0 %v2284_v39 }
 0x2ab   : > { %v2271_v38 = vunpack.i.h.bf16 %v2269_v14  ;;  %v2270_v50 = vunpack.i.l.bf16 %v2269_v14  ;;  %1906 = vmatprep.subr.bf16.mxu0 %v2321_v60 }
 0x2ac   : > { %1073 = vmatmul.mubr.bf16.gmra.mrb[16].mxu1 %v897_v29 }
 0x2ad   : > { %1790 = vmatprep.mubr.msk.bf16.mxu1 %vm781_vm6, %v900_v30  ;;  %v887_v23 = vsel %vm797_vm8, %v880_v35, %v2270_v50  ;;  %v888_v54 = vsel %vm797_vm8, %v881_v52, %v2271_v38 }
 0x2ae   : > { %v901_v37 = vpack.c.bf16 %v888_v54, %v887_v23  ;;  %1907 = vmatpush3.bf16.msra.mxu0 %v2285_v28 }
 0x2af   : > { %1912 = vmatprep.subr.bf16.mxu0 %v2321_v60 }
 0x2b4   : > { %1081 = vmatmul.mubr.bf16.gmra.mrb[20].mxu1 %v899_v16 }
 0x2b5   : > { %1791 = vmatprep.mubr.msk.bf16.mxu1 %vm781_vm6, %v902_v47 }
 0x2bc   : > { %1089 = vmatmul.mubr.bf16.gmra.mrb[24].mxu1 %v901_v37 }
 0x2bd   : > { %1976 = vmatprep.mubr.msk.bf16.mxu1 %vm2326_vm9, %v2321_v60 }
 0x35f   : > { %v1042_v55 = vpop.f32.mrb[0].mxu1 }
 0x360   : > { %v1044_v56 = vpop.f32.mrb[1].mxu1  ;;  %v1043_v11 = vadd.f32 %v1774_v4, %v1042_v55 }
 0x361   : > { %v1045_v57 = vpop.f32.mrb[2].mxu1  ;;  %v2298_v56 = vld [vmem:[%s2880_s1 + $0x70] sm:$0xff]  }
 0x362   : > { %v1047_v58 = vpop.f32.mrb[3].mxu1  ;;  %v1097_v8 = vmax.f32 %v1043_v11, 0.0  ;;  %v1046_v36 = vadd.f32 %v1774_v4, %v1045_v57  ;;  %1961 = vmatpush3.bf16.msra.mxu1 %v2298_v56  ;;  %v2299_v57 = vld [vmem:[%s2880_s1 + $0x78] sm:$0xff]  }
 0x363   : > { %1962 = vmatprep.subr.bf16.mxu1 %v2321_v60  ;;  %v2300_v58 = vld [vmem:[%s2880_s1 + $0x80] sm:$0xff]  }
 0x364   : > { %v1098_v25 = vmax.f32 %v1046_v36, 0.0 }
 0x366   : > { %1963 = vmatpush3.bf16.msra.mxu1 %v2299_v57 }
 0x367   : > { %v1050_v59 = vpop.f32.mrb[4].mxu1  ;;  %1964 = vmatprep.subr.bf16.mxu1 %v2321_v60 }
 0x368   : > { %v1052_v61 = vpop.f32.mrb[5].mxu1  ;;  %v1051_v22 = vadd.f32 %v1774_v4, %v1050_v59  ;;  %v2301_v59 = vld [vmem:[%s2880_s1 + $0x88] sm:$0xff]  }
 0x369   : > { %v1053_v62 = vpop.f32.mrb[6].mxu1  ;;  %v2302_v61 = vld [vmem:[%s2880_s1 + $0x90] sm:$0xff]  }
 0x36a   : > { %v1055_v63 = vpop.f32.mrb[7].mxu1  ;;  %v1099_v33 = vmax.f32 %v1051_v22, 0.0  ;;  %v1054_v30 = vadd.f32 %v1774_v4, %v1053_v62  ;;  %1965 = vmatpush3.bf16.msra.mxu1 %v2300_v58  ;;  %v2303_v62 = vld [vmem:[%s2880_s1 + $0x98] sm:$0xff]  }
 0x36b   : > { %1966 = vmatprep.subr.bf16.mxu1 %v2321_v60  ;;  %v2304_v63 = vld [vmem:[%s2880_s1 + $0xa0] sm:$0xff]  }
 0x36c   : > { %v1100_v51 = vmax.f32 %v1054_v30, 0.0  ;;  %v2296_v30 = vld [vmem:[%s2880_s1 + $0x60] sm:$0xff]  }
 0x36e   : > { %1967 = vmatpush3.bf16.msra.mxu1 %v2301_v59 }
 0x36f   : > { %v1058_v0 = vpop.f32.mrb[8].mxu1  ;;  %1968 = vmatprep.subr.bf16.mxu1 %v2321_v60 }
 0x370   : > { %v1060_v1 = vpop.f32.mrb[9].mxu1  ;;  %v1059_v34 = vadd.f32 %v1774_v4, %v1058_v0 }
 0x371   : > { %v1061_v2 = vpop.f32.mrb[10].mxu1 }
 0x372   : > { %v1063_v3 = vpop.f32.mrb[11].mxu1  ;;  %v1101_v6 = vmax.f32 %v1059_v34, 0.0  ;;  %v1062_v45 = vadd.f32 %v1774_v4, %v1061_v2  ;;  %1969 = vmatpush3.bf16.msra.mxu1 %v2302_v61  ;;  %v2286_v2 = vld [vmem:[%s2880_s1 + $0x10] sm:$0xff]  }
 0x373   : > { %1970 = vmatprep.subr.bf16.mxu1 %v2321_v60 }
 0x374   : > { %v1102_v35 = vmax.f32 %v1062_v45, 0.0  ;;  %v1814_v45 = vld [vmem:[%s2881_s2 + $0x3] ss:$0 sm:$0xff] }
 0x376   : > { %1971 = vmatpush3.bf16.msra.mxu1 %v2303_v62 }
 0x377   : > { %v1066_v5 = vpop.f32.mrb[12].mxu1  ;;  %1972 = vmatprep.subr.bf16.mxu1 %v2321_v60 }
 0x378   : > { %v1068_v12 = vpop.f32.mrb[13].mxu1  ;;  %v1067_v48 = vadd.f32 %v1774_v4, %v1066_v5 }
 0x379   : > { %v1069_v31 = vpop.f32.mrb[14].mxu1  ;;  %v2288_v12 = vld [vmem:[%s2880_s1 + $0x20] sm:$0xff]  }
 0x37a   : > { %v1070_v13 = vadd.f32 %v1774_v4, %v1069_v31  ;;  %v1071_v15 = vpop.f32.mrb[15].mxu1  ;;  %v1103_v37 = vmax.f32 %v1067_v48, 0.0  ;;  %1973 = vmatpush3.bf16.msra.mxu1 %v2304_v63 }
 0x37b   : > { %1974 = vmatprep.subr.bf16.mxu1 %v2321_v60 }
 0x37c   : > { %v1104_v17 = vmax.f32 %v1070_v13, 0.0  ;;  %v2289_v13 = vld [vmem:[%s2880_s1 + $0x28] sm:$0xff]  }
 0x37e   : > { %v2734_v18 = vmax.f32 %v1097_v8, %v1104_v17  ;;  %v2290_v17 = vld [vmem:[%s2880_s1 + $0x30] sm:$0xff]  }
 0x37f   : > { %v1074_v21 = vpop.f32.mrb[16].mxu1 }
 0x380   : > { %v1075_v9 = vadd.f32 %v1774_v4, %v1074_v21  ;;  %v1076_v40 = vpop.f32.mrb[17].mxu1  ;;  %1125 = vrot.lane.b32.xlu0 %v2734_v18, %s2322_s4 }
 0x381   : > { %v1077_v24 = vpop.f32.mrb[18].mxu1 }
 0x382   : > { %v1105_v26 = vmax.f32 %v1075_v9, 0.0  ;;  %v1078_v19 = vadd.f32 %v1774_v4, %v1077_v24  ;;  %v1079_v27 = vpop.f32.mrb[19].mxu1  ;;  %v2292_v9 = vld [vmem:[%s2880_s1 + $0x40] sm:$0xff]   ;;  %v2293_v24 = vld [vmem:[%s2880_s1 + $0x48] sm:$0xff]  }
 0x384   : > { %v2738_v10 = vmax.f32 %v1098_v25, %v1105_v26  ;;  %v1106_v29 = vmax.f32 %v1078_v19, 0.0  ;;  %v2294_v19 = vld [vmem:[%s2880_s1 + $0x50] sm:$0xff]  }
 0x386   : > { %v2740_v20 = vmax.f32 %v1099_v33, %v1106_v29  ;;  %1127 = vrot.lane.b32.xlu1 %v2738_v10, %s2322_s4  ;;  %v2295_v33 = vld [vmem:[%s2880_s1 + $0x58] sm:$0xff]  }
 0x387   : > { %v1082_v32 = vpop.f32.mrb[20].mxu1 }
 0x388   : > { %v1083_v7 = vadd.f32 %v1774_v4, %v1082_v32  ;;  %v1084_v41 = vpop.f32.mrb[21].mxu1  ;;  %1129 = vrot.lane.b32.xlu0 %v2740_v20, %s2322_s4  ;;  %v2297_v32 = vld [vmem:[%s2880_s1 + $0x68] sm:$0xff]  }
 0x389   : > { %v1085_v42 = vpop.f32.mrb[22].mxu1 }
 0x38a   : > { %v1107_v43 = vmax.f32 %v1083_v7, 0.0  ;;  %v1086_v44 = vadd.f32 %v1774_v4, %v1085_v42  ;;  %v1087_v46 = vpop.f32.mrb[23].mxu1  ;;  %v2305_v42 = vld [vmem:[%s2880_s1 + $0xa8] sm:$0xff]  }
 0x38b   : > { %1975 = vmatpush3.bf16.msra.mxu1 %v2305_v42 }
 0x38c   : > { %v2746_v14 = vmax.f32 %v1100_v51, %v1107_v43  ;;  %v1108_v53 = vmax.f32 %v1086_v44, 0.0  ;;  %v1792_v51 = vld [vmem:[%s2881_s2 + $0x2] ss:$0 sm:$0xff] }
 0x38e   : > { %v2748_v16 = vmax.f32 %v1101_v6, %v1108_v53  ;;  %1131 = vrot.lane.b32.xlu1 %v2746_v14, %s2322_s4 }
 0x38f   : > { %v1090_v47 = vpop.f32.mrb[24].mxu1 }
 0x390   : > { %v1091_v49 = vadd.f32 %v1774_v4, %v1090_v47  ;;  %v1092_v38 = vpop.f32.mrb[25].mxu1  ;;  %1133 = vrot.lane.b32.xlu0 %v2748_v16, %s2322_s4 }
 0x391   : > { %v1093_v50 = vpop.f32.mrb[26].mxu1 }
 0x392   : > { %v1109_v52 = vmax.f32 %v1091_v49, 0.0  ;;  %v1094_v23 = vadd.f32 %v1774_v4, %v1093_v50  ;;  %v1095_v54 = vpop.f32.mrb[27].mxu1  ;;  %v2287_v4 = vld [vmem:[%s2880_s1 + $0x18] sm:$0xff]  }
 0x394   : > { %v2754_v39 = vmax.f32 %v1102_v35, %v1109_v52  ;;  %v1110_v28 = vmax.f32 %v1094_v23, 0.0 }
 0x396   : > { %v2756_v55 = vmax.f32 %v1103_v37, %v1110_v28  ;;  %1135 = vrot.lane.b32.xlu1 %v2754_v39, %s2322_s4 }
 0x398   : > { %1137 = vrot.lane.b32.xlu0 %v2756_v55, %s2322_s4 }
 0x3f2   : > { %v1126_v0 = vpop.permute.xlu0 %1125 }
 0x3f3   : > { %v1146_v1 = vmax.f32 %v2734_v18, %v1126_v0  ;;  %v2291_v18 = vld [vmem:[%s2880_s1 + $0x38] sm:$0xff]  }
 0x3f5   : > { %v1158_v3 = vpack.c.bf16 %v1146_v1, %v1146_v1 }
 0x3f7   : > { %1909 = vmatmul.mubr.msk.bf16.vlgmr.msra.gmra.mrb[28].mxu0 %vm781_vm6, %v1158_v3 }
 0x3f8   : > { %1913 = vmatpush3.bf16.msra.mxu0 %v2286_v2  ;;  %1916 = vmatprep.mubr.msk.bf16.mxu0 %vm2326_vm9, %v2321_v60  ;;  %v1128_v5 = vpop.permute.xlu1 %1127 }
 0x3f9   : > { %1914 = vmatprep.subr.bf16.mxu0 %v2321_v60  ;;  %v1147_v11 = vmax.f32 %v2738_v10, %v1128_v5 }
 0x3fa   : > { %v1130_v15 = vpop.permute.xlu0 %1129 }
 0x3fb   : > { %v1219_v31 = vpack.c.bf16 %v1147_v11, %v1147_v11  ;;  %v1148_v8 = vmax.f32 %v2740_v20, %v1130_v15 }
 0x3fc   : > { %1915 = vmatpush3.bf16.msra.mxu0 %v2287_v4 }
 0x3fd   : > { %1920 = vmatprep.subr.bf16.mxu0 %v2321_v60  ;;  %v1280_v36 = vpack.c.bf16 %v1148_v8, %v1148_v8 }
 0x400   : > { %v1132_v21 = vpop.permute.xlu1 %1131 }
 0x401   : > { %v1149_v22 = vmax.f32 %v2746_v14, %v1132_v21 }
 0x402   : > { %v1134_v25 = vpop.permute.xlu0 %1133 }
 0x403   : > { %1917 = vmatmul.mubr.msk.bf16.vlgmr.msra.gmra.mrb[28].mxu0 %vm781_vm6, %v1219_v31  ;;  %v1341_v40 = vpack.c.bf16 %v1149_v22, %v1149_v22  ;;  %v1150_v26 = vmax.f32 %v2748_v16, %v1134_v25 }
 0x404   : > { %1921 = vmatpush3.bf16.msra.mxu0 %v2288_v12  ;;  %1924 = vmatprep.mubr.msk.bf16.mxu0 %vm2326_vm9, %v2321_v60 }
 0x405   : > { %1922 = vmatprep.subr.bf16.mxu0 %v2321_v60  ;;  %v1402_v27 = vpack.c.bf16 %v1150_v26, %v1150_v26 }
 0x408   : > { %1923 = vmatpush3.bf16.msra.mxu0 %v2289_v13  ;;  %v1136_v10 = vpop.permute.xlu1 %1135 }
 0x409   : > { %1928 = vmatprep.subr.bf16.mxu0 %v2321_v60  ;;  %v1151_v29 = vmax.f32 %v2754_v39, %v1136_v10 }
 0x40a   : > { %v1138_v34 = vpop.permute.xlu0 %1137 }
 0x40b   : > { %v1463_v20 = vpack.c.bf16 %v1151_v29, %v1151_v29  ;;  %v1152_v7 = vmax.f32 %v2756_v55, %v1138_v34 }
 0x40d   : > { %v1524_v41 = vpack.c.bf16 %v1152_v7, %v1152_v7 }
 0x40f   : > { %1925 = vmatmul.mubr.msk.bf16.vlgmr.msra.gmra.mrb[28].mxu0 %vm781_vm6, %v1280_v36 }
 0x410   : > { %1929 = vmatpush3.bf16.msra.mxu0 %v2290_v17  ;;  %1932 = vmatprep.mubr.msk.bf16.mxu0 %vm2326_vm9, %v2321_v60 }
 0x411   : > { %1930 = vmatprep.subr.bf16.mxu0 %v2321_v60 }
 0x414   : > { %1931 = vmatpush3.bf16.msra.mxu0 %v2291_v18 }
 0x415   : > { %1936 = vmatprep.subr.bf16.mxu0 %v2321_v60 }
 0x41b   : > { %1933 = vmatmul.mubr.msk.bf16.vlgmr.msra.gmra.mrb[28].mxu0 %vm781_vm6, %v1341_v40 }
 0x41c   : > { %1937 = vmatpush3.bf16.msra.mxu0 %v2292_v9  ;;  %1940 = vmatprep.mubr.msk.bf16.mxu0 %vm2326_vm9, %v2321_v60 }
 0x41d   : > { %1938 = vmatprep.subr.bf16.mxu0 %v2321_v60 }
 0x420   : > { %1939 = vmatpush3.bf16.msra.mxu0 %v2293_v24 }
 0x421   : > { %1944 = vmatprep.subr.bf16.mxu0 %v2321_v60 }
 0x427   : > { %1941 = vmatmul.mubr.msk.bf16.vlgmr.msra.gmra.mrb[28].mxu0 %vm781_vm6, %v1402_v27 }
 0x428   : > { %1945 = vmatpush3.bf16.msra.mxu0 %v2294_v19  ;;  %1948 = vmatprep.mubr.msk.bf16.mxu0 %vm2326_vm9, %v2321_v60 }
 0x429   : > { %1946 = vmatprep.subr.bf16.mxu0 %v2321_v60 }
 0x42c   : > { %1947 = vmatpush3.bf16.msra.mxu0 %v2295_v33 }
 0x42d   : > { %1952 = vmatprep.subr.bf16.mxu0 %v2321_v60 }
 0x433   : > { %1949 = vmatmul.mubr.msk.bf16.vlgmr.msra.gmra.mrb[28].mxu0 %vm781_vm6, %v1463_v20 }
 0x434   : > { %1953 = vmatpush3.bf16.msra.mxu0 %v2296_v30  ;;  %1956 = vmatprep.mubr.msk.bf16.mxu0 %vm2326_vm9, %v2321_v60 }
 0x435   : > { %1954 = vmatprep.subr.bf16.mxu0 %v2321_v60 }
 0x438   : > { %1955 = vmatpush3.bf16.msra.mxu0 %v2297_v32 }
 0x43f   : > { %1957 = vmatmul.mubr.msk.bf16.vlgmr.msra.gmra.mrb[28].mxu0 %vm781_vm6, %v1524_v41 }
 0x512   : > { %v1578_v43 = vpop.f32.mrb[28].mxu0 }
 0x513   : > { %v1980_v44 = vadd.f32 %v1792_v51, %v1578_v43  ;;  %v1958_v60 = vpop.f32.mrb[29].mxu0 }
 0x514   : > { %v1581_v46 = vpop.f32.mrb[30].mxu0 }
 0x515   : > { %v1585_v6 = vmax.f32 %v1980_v44, 0.0  ;;  %v1959_v14 = vpop.f32.mrb[31].mxu0 }
 0x517   : > { %v1586_v53 = vpack.c.bf16 %v1585_v6, %v1585_v6 }
 0x519   : > { %1977 = vmatmul.mubr.bf16.vlgmr.msra.gmra.mrb[28].mxu1 %v1586_v53 }
 0x5ec   : > { %v1689_v16 = vpop.f32.mrb[28].mxu1 }
 0x5ed   : > { %v1690_v47 = vadd.f32 %v1814_v45, %v1689_v16  ;;  %v1978_v48 = vpop.f32.mrb[29].mxu1 }
 0x5ee   : > { %v1692_v49 = vpop.f32.mrb[30].mxu1 }
 0x5ef   : > { %1695 = vst [vmem:[%s168_s6] sm:$0xff] %v1690_v47  ;;  %v1979_v38 = vpop.f32.mrb[31].mxu1 }
 0x5f0 PF: > { %s13_s12 = sadd.s32 1, %s2312_s12  }
 0x5f1   : > { %p10_p4 = scmp.ge.s32.totalorder %s13_s12, 6  }
 0x5f3   :  { %12 = sbr.rel (!%p10_p4) target bundleno = 1 (0x1), region = 62 }

</bundles_post_ra>
